<compile_context>
chip_gen: v6e
topology: v6e:2x2x1
jax: 0.10.0
libtpu: 0.0.40
codegen_flags: <defaults>
</compile_context>

<pallas_src>
import jax
import jax.numpy as jnp
from jax import lax
from jax.experimental import pallas as pl
from jax.experimental.pallas import tpu as pltpu

HIDDEN = 32     # hidden_size
OUTPUT = 64     # output_size (vocab)
LAYERS = 2      # num_layers
SEQ = 8         # sequence length
BATCH = 2       # batch size


def decoder_kernel(tok_ref, emb_ref, wih_ref, whh_ref, b_ref,
                   h0_ref, c0_ref, w_out_ref, b_out_ref,
                   logp_ref, hn_ref, cn_ref):
    """Fused Decoder forward.

    tok_ref   : (S*B, 1)  int32 token ids
    emb_ref   : (O, H)    embedding table
    wih_ref   : (L, H, 4H) input->gates weights (transposed)
    whh_ref   : (L, H, 4H) hidden->gates weights (transposed)
    b_ref     : (L, 1, 4H) combined bias (b_ih + b_hh)
    h0/c0     : (L, B, H)
    w_out_ref : (H, O)    head weight (transposed)
    b_out_ref : (1, O)
    logp_ref  : (B, O)    log-softmax(out(h_lastlayer[t=0]))
    hn/cn     : (L, B, H) final hidden / cell states per layer
    """
    S, B, H, L, O = SEQ, BATCH, HIDDEN, LAYERS, OUTPUT

    # ---- Embedding gather as one-hot matmul (exact), then ReLU ----
    tok = tok_ref[...]                                              # (S*B, 1) int32
    lane_ids = lax.broadcasted_iota(jnp.int32, (S * B, O), 1)       # (S*B, O)
    onehot = (tok == lane_ids).astype(jnp.float32)                  # (S*B, O)
    x = jnp.dot(onehot, emb_ref[...],
                preferred_element_type=jnp.float32)                 # (S*B, H)
    x = jnp.maximum(x, 0.0)                                         # F.relu(embedded)

    out0 = None
    for l in range(L):                       # static unroll over layers
        w_i = wih_ref[l]                     # (H, 4H)
        w_h = whh_ref[l]                     # (H, 4H)
        b = b_ref[l]                         # (1, 4H)

        # Hoisted input-side gate matmul for the whole sequence (off the
        # recurrence critical path): one (S*B, H) @ (H, 4H) MXU push.
        xg = jnp.dot(x, w_i, preferred_element_type=jnp.float32) + b   # (S*B, 4H)

        h = h0_ref[l]                        # (B, H)
        c = c0_ref[l]                        # (B, H)
        hs = []
        for t in range(S):                   # static unroll (S=8)
            gates = xg[t * B:(t + 1) * B, :] + jnp.dot(
                h, w_h, preferred_element_type=jnp.float32)            # (B, 4H)
            # Full-vreg nonlinearities (gates is exactly one lane-dense tile),
            # then static slices in PyTorch gate order [i | f | g | o].
            sig = jax.nn.sigmoid(gates)
            th = jnp.tanh(gates)
            i_g = sig[:, 0 * H:1 * H]
            f_g = sig[:, 1 * H:2 * H]
            g_g = th[:, 2 * H:3 * H]
            o_g = sig[:, 3 * H:4 * H]
            c = f_g * c + i_g * g_g
            h = o_g * jnp.tanh(c)
            hs.append(h)

        hn_ref[l] = h
        cn_ref[l] = c
        x = jnp.concatenate(hs, axis=0)      # (S*B, H) input to next layer
        out0 = hs[0]                         # last layer's t=0 output feeds the head

    # ---- Linear (H -> O) + LogSoftmax(dim=1) on time step 0 ----
    logits = jnp.dot(out0, w_out_ref[...],
                     preferred_element_type=jnp.float32) + b_out_ref[...]   # (B, O)
    m = jnp.max(logits, axis=1, keepdims=True)
    lse = m + jnp.log(jnp.sum(jnp.exp(logits - m), axis=1, keepdims=True))
    logp_ref[...] = logits - lse


def decoder_forward(tokens, hidden, params):
    """tokens: (S, B) int32 ; hidden = (h0, c0) each (L, B, H)."""
    h0, c0 = hidden
    tok2d = tokens.reshape(SEQ * BATCH, 1).astype(jnp.int32)
    b_comb = params["b_ih"] + params["b_hh"]          # fold both LSTM biases once

    vmem = pl.BlockSpec(memory_space=pltpu.MemorySpace.VMEM)

    # Rough advisory cost: gather + 2x(hoisted + S recurrent) gate matmuls + head.
    cost = pl.CostEstimate(flops=620_000, transcendentals=11_000,
                           bytes_accessed=150_000)

    log_probs, h_n, c_n = pl.pallas_call(
        decoder_kernel,
        out_shape=(
            jax.ShapeDtypeStruct((BATCH, OUTPUT), jnp.float32),
            jax.ShapeDtypeStruct((LAYERS, BATCH, HIDDEN), jnp.float32),
            jax.ShapeDtypeStruct((LAYERS, BATCH, HIDDEN), jnp.float32),
        ),
        in_specs=[vmem] * 9,
        out_specs=(vmem, vmem, vmem),
        compiler_params=pltpu.CompilerParams(vmem_limit_bytes=4 * 1024 * 1024),
        cost_estimate=cost,
    )(tok2d, params["embedding"], params["w_ih_t"], params["w_hh_t"], b_comb,
      h0, c0, params["w_out_t"], params["b_out"])

    return log_probs, (h_n, c_n)


def init_params(key):
    """Deterministic synthetic init, PyTorch-shaped parameters."""
    ks = jax.random.split(key, 7)
    bound = 1.0 / jnp.sqrt(jnp.float32(HIDDEN))
    emb = jax.random.normal(ks[0], (OUTPUT, HIDDEN), jnp.float32)            # nn.Embedding
    w_ih = jax.random.uniform(ks[1], (LAYERS, 4 * HIDDEN, HIDDEN), jnp.float32, -bound, bound)
    w_hh = jax.random.uniform(ks[2], (LAYERS, 4 * HIDDEN, HIDDEN), jnp.float32, -bound, bound)
    b_ih = jax.random.uniform(ks[3], (LAYERS, 1, 4 * HIDDEN), jnp.float32, -bound, bound)
    b_hh = jax.random.uniform(ks[4], (LAYERS, 1, 4 * HIDDEN), jnp.float32, -bound, bound)
    w_out = jax.random.uniform(ks[5], (OUTPUT, HIDDEN), jnp.float32, -bound, bound)
    b_out = jax.random.uniform(ks[6], (1, OUTPUT), jnp.float32, -bound, bound)
    return {
        "embedding": emb,
        "w_ih_t": jnp.transpose(w_ih, (0, 2, 1)),   # (L, H, 4H)
        "w_hh_t": jnp.transpose(w_hh, (0, 2, 1)),   # (L, H, 4H)
        "b_ih": b_ih,
        "b_hh": b_hh,
        "w_out_t": w_out.T,                         # (H, O)
        "b_out": b_out,
    }


if __name__ == "__main__":
    key = jax.random.PRNGKey(0)
    pkey, xkey, hkey, ckey = jax.random.split(key, 4)
    params = init_params(pkey)

    tokens = jax.random.randint(xkey, (SEQ, BATCH), 0, OUTPUT, dtype=jnp.int32)
    h0 = jax.random.normal(hkey, (LAYERS, BATCH, HIDDEN), jnp.float32)
    c0 = jax.random.normal(ckey, (LAYERS, BATCH, HIDDEN), jnp.float32)

    log_probs, (h_n, c_n) = jax.jit(decoder_forward)(tokens, (h0, c0), params)
    jax.block_until_ready((log_probs, h_n, c_n))

    assert log_probs.shape == (BATCH, OUTPUT)
    assert h_n.shape == (LAYERS, BATCH, HIDDEN) and c_n.shape == (LAYERS, BATCH, HIDDEN)
    assert bool(jnp.all(jnp.isfinite(log_probs)))
    print("KERNEL_OK")
</pallas_src>

<mosaic_0001>
module attributes {stable_mosaic.version = 11 : i64} {
  func.func @decoder_kernel(%arg0: memref<16x1xi32, #tpu.memory_space<vmem>>, %arg1: memref<64x32xf32, #tpu.memory_space<vmem>>, %arg2: memref<2x32x128xf32, #tpu.memory_space<vmem>>, %arg3: memref<2x32x128xf32, #tpu.memory_space<vmem>>, %arg4: memref<2x1x128xf32, #tpu.memory_space<vmem>>, %arg5: memref<2x2x32xf32, #tpu.memory_space<vmem>>, %arg6: memref<2x2x32xf32, #tpu.memory_space<vmem>>, %arg7: memref<32x64xf32, #tpu.memory_space<vmem>>, %arg8: memref<1x64xf32, #tpu.memory_space<vmem>>, %arg9: memref<2x64xf32, #tpu.memory_space<vmem>>, %arg10: memref<2x2x32xf32, #tpu.memory_space<vmem>>, %arg11: memref<2x2x32xf32, #tpu.memory_space<vmem>>) attributes {dimension_semantics = [], scalar_prefetch = 0 : i64, scratch_operands = 0 : i64, tpu.core_type = #tpu.core_type<tc>} {
    %c0 = arith.constant 0 : index
    %c0_0 = arith.constant 0 : index
    %0 = vector.load %arg0[%c0, %c0_0] : memref<16x1xi32, #tpu.memory_space<vmem>>, vector<16x1xi32>
    %1 = tpu.iota {dimensions = array<i32: 1>} : vector<16x64xi32>
    %2 = vector.broadcast %0 : vector<16x1xi32> to vector<16x64xi32>
    %3 = arith.cmpi eq, %2, %1 : vector<16x64xi32>
    %4 = arith.extui %3 : vector<16x64xi1> to vector<16x64xi32>
    %5 = arith.sitofp %4 : vector<16x64xi32> to vector<16x64xf32>
    %c0_1 = arith.constant 0 : index
    %c0_2 = arith.constant 0 : index
    %6 = vector.load %arg1[%c0_1, %c0_2] : memref<64x32xf32, #tpu.memory_space<vmem>>, vector<64x32xf32>
    %cst = arith.constant dense<0.000000e+00> : vector<16x32xf32>
    %7 = tpu.matmul %5, %6, %cst {dimension_numbers = #tpu.dot_dimension_numbers<[1], [0], [0], [1], [0, 0, 1, 1], [], []>} : vector<16x64xf32>, vector<64x32xf32>, vector<16x32xf32> -> vector<16x32xf32>
    %cst_3 = arith.constant 0.000000e+00 : f32
    %8 = vector.broadcast %cst_3 : f32 to vector<16x32xf32>
    %9 = arith.maximumf %7, %8 : vector<16x32xf32>
    %c0_4 = arith.constant 0 : index
    %c0_5 = arith.constant 0 : index
    %c0_6 = arith.constant 0 : index
    %10 = vector.load %arg2[%c0_4, %c0_5, %c0_6] : memref<2x32x128xf32, #tpu.memory_space<vmem>>, vector<1x32x128xf32>
    %11 = vector.shape_cast %10 : vector<1x32x128xf32> to vector<32x128xf32>
    %c0_7 = arith.constant 0 : index
    %c0_8 = arith.constant 0 : index
    %c0_9 = arith.constant 0 : index
    %12 = vector.load %arg3[%c0_7, %c0_8, %c0_9] : memref<2x32x128xf32, #tpu.memory_space<vmem>>, vector<1x32x128xf32>
    %13 = vector.shape_cast %12 : vector<1x32x128xf32> to vector<32x128xf32>
    %c0_10 = arith.constant 0 : index
    %c0_11 = arith.constant 0 : index
    %c0_12 = arith.constant 0 : index
    %14 = vector.load %arg4[%c0_10, %c0_11, %c0_12] : memref<2x1x128xf32, #tpu.memory_space<vmem>>, vector<1x1x128xf32>
    %15 = vector.shape_cast %14 : vector<1x1x128xf32> to vector<1x128xf32>
    %cst_13 = arith.constant dense<0.000000e+00> : vector<16x128xf32>
    %16 = tpu.matmul %9, %11, %cst_13 {dimension_numbers = #tpu.dot_dimension_numbers<[1], [0], [0], [1], [0, 0, 1, 1], [], []>} : vector<16x32xf32>, vector<32x128xf32>, vector<16x128xf32> -> vector<16x128xf32>
    %17 = vector.broadcast %15 : vector<1x128xf32> to vector<16x128xf32>
    %18 = arith.addf %16, %17 : vector<16x128xf32>
    %c0_14 = arith.constant 0 : index
    %c0_15 = arith.constant 0 : index
    %c0_16 = arith.constant 0 : index
    %19 = vector.load %arg5[%c0_14, %c0_15, %c0_16] : memref<2x2x32xf32, #tpu.memory_space<vmem>>, vector<1x2x32xf32>
    %20 = vector.shape_cast %19 : vector<1x2x32xf32> to vector<2x32xf32>
    %c0_17 = arith.constant 0 : index
    %c0_18 = arith.constant 0 : index
    %c0_19 = arith.constant 0 : index
    %21 = vector.load %arg6[%c0_17, %c0_18, %c0_19] : memref<2x2x32xf32, #tpu.memory_space<vmem>>, vector<1x2x32xf32>
    %22 = vector.shape_cast %21 : vector<1x2x32xf32> to vector<2x32xf32>
    %23 = vector.extract_strided_slice %18 {offsets = [0, 0], sizes = [2, 128], strides = [1, 1]} : vector<16x128xf32> to vector<2x128xf32>
    %cst_20 = arith.constant dense<0.000000e+00> : vector<2x128xf32>
    %24 = tpu.matmul %20, %13, %cst_20 {dimension_numbers = #tpu.dot_dimension_numbers<[1], [0], [0], [1], [0, 0, 1, 1], [], []>} : vector<2x32xf32>, vector<32x128xf32>, vector<2x128xf32> -> vector<2x128xf32>
    %25 = arith.addf %23, %24 : vector<2x128xf32>
    %26 = arith.negf %25 : vector<2x128xf32>
    %27 = math.exp %26 : vector<2x128xf32>
    %cst_21 = arith.constant 1.000000e+00 : f32
    %28 = vector.broadcast %cst_21 : f32 to vector<2x128xf32>
    %29 = arith.addf %28, %27 : vector<2x128xf32>
    %30 = arith.divf %28, %29 : vector<2x128xf32>
    %31 = math.tanh %25 : vector<2x128xf32>
    %32 = vector.extract_strided_slice %30 {offsets = [0, 0], sizes = [2, 32], strides = [1, 1]} : vector<2x128xf32> to vector<2x32xf32>
    %33 = vector.extract_strided_slice %30 {offsets = [0, 32], sizes = [2, 32], strides = [1, 1]} : vector<2x128xf32> to vector<2x32xf32>
    %34 = vector.extract_strided_slice %31 {offsets = [0, 64], sizes = [2, 32], strides = [1, 1]} : vector<2x128xf32> to vector<2x32xf32>
    %35 = vector.extract_strided_slice %30 {offsets = [0, 96], sizes = [2, 32], strides = [1, 1]} : vector<2x128xf32> to vector<2x32xf32>
    %36 = arith.mulf %33, %22 : vector<2x32xf32>
    %37 = arith.mulf %32, %34 : vector<2x32xf32>
    %38 = arith.addf %36, %37 : vector<2x32xf32>
    %39 = math.tanh %38 : vector<2x32xf32>
    %40 = arith.mulf %35, %39 : vector<2x32xf32>
    %41 = vector.extract_strided_slice %18 {offsets = [2, 0], sizes = [2, 128], strides = [1, 1]} : vector<16x128xf32> to vector<2x128xf32>
    %cst_22 = arith.constant dense<0.000000e+00> : vector<2x128xf32>
    %42 = tpu.matmul %40, %13, %cst_22 {dimension_numbers = #tpu.dot_dimension_numbers<[1], [0], [0], [1], [0, 0, 1, 1], [], []>} : vector<2x32xf32>, vector<32x128xf32>, vector<2x128xf32> -> vector<2x128xf32>
    %43 = arith.addf %41, %42 : vector<2x128xf32>
    %44 = arith.negf %43 : vector<2x128xf32>
    %45 = math.exp %44 : vector<2x128xf32>
    %cst_23 = arith.constant 1.000000e+00 : f32
    %46 = vector.broadcast %cst_23 : f32 to vector<2x128xf32>
    %47 = arith.addf %46, %45 : vector<2x128xf32>
    %48 = arith.divf %46, %47 : vector<2x128xf32>
    %49 = math.tanh %43 : vector<2x128xf32>
    %50 = vector.extract_strided_slice %48 {offsets = [0, 0], sizes = [2, 32], strides = [1, 1]} : vector<2x128xf32> to vector<2x32xf32>
    %51 = vector.extract_strided_slice %48 {offsets = [0, 32], sizes = [2, 32], strides = [1, 1]} : vector<2x128xf32> to vector<2x32xf32>
    %52 = vector.extract_strided_slice %49 {offsets = [0, 64], sizes = [2, 32], strides = [1, 1]} : vector<2x128xf32> to vector<2x32xf32>
    %53 = vector.extract_strided_slice %48 {offsets = [0, 96], sizes = [2, 32], strides = [1, 1]} : vector<2x128xf32> to vector<2x32xf32>
    %54 = arith.mulf %51, %38 : vector<2x32xf32>
    %55 = arith.mulf %50, %52 : vector<2x32xf32>
    %56 = arith.addf %54, %55 : vector<2x32xf32>
    %57 = math.tanh %56 : vector<2x32xf32>
    %58 = arith.mulf %53, %57 : vector<2x32xf32>
    %59 = vector.extract_strided_slice %18 {offsets = [4, 0], sizes = [2, 128], strides = [1, 1]} : vector<16x128xf32> to vector<2x128xf32>
    %cst_24 = arith.constant dense<0.000000e+00> : vector<2x128xf32>
    %60 = tpu.matmul %58, %13, %cst_24 {dimension_numbers = #tpu.dot_dimension_numbers<[1], [0], [0], [1], [0, 0, 1, 1], [], []>} : vector<2x32xf32>, vector<32x128xf32>, vector<2x128xf32> -> vector<2x128xf32>
    %61 = arith.addf %59, %60 : vector<2x128xf32>
    %62 = arith.negf %61 : vector<2x128xf32>
    %63 = math.exp %62 : vector<2x128xf32>
    %cst_25 = arith.constant 1.000000e+00 : f32
    %64 = vector.broadcast %cst_25 : f32 to vector<2x128xf32>
    %65 = arith.addf %64, %63 : vector<2x128xf32>
    %66 = arith.divf %64, %65 : vector<2x128xf32>
    %67 = math.tanh %61 : vector<2x128xf32>
    %68 = vector.extract_strided_slice %66 {offsets = [0, 0], sizes = [2, 32], strides = [1, 1]} : vector<2x128xf32> to vector<2x32xf32>
    %69 = vector.extract_strided_slice %66 {offsets = [0, 32], sizes = [2, 32], strides = [1, 1]} : vector<2x128xf32> to vector<2x32xf32>
    %70 = vector.extract_strided_slice %67 {offsets = [0, 64], sizes = [2, 32], strides = [1, 1]} : vector<2x128xf32> to vector<2x32xf32>
    %71 = vector.extract_strided_slice %66 {offsets = [0, 96], sizes = [2, 32], strides = [1, 1]} : vector<2x128xf32> to vector<2x32xf32>
    %72 = arith.mulf %69, %56 : vector<2x32xf32>
    %73 = arith.mulf %68, %70 : vector<2x32xf32>
    %74 = arith.addf %72, %73 : vector<2x32xf32>
    %75 = math.tanh %74 : vector<2x32xf32>
    %76 = arith.mulf %71, %75 : vector<2x32xf32>
    %77 = vector.extract_strided_slice %18 {offsets = [6, 0], sizes = [2, 128], strides = [1, 1]} : vector<16x128xf32> to vector<2x128xf32>
    %cst_26 = arith.constant dense<0.000000e+00> : vector<2x128xf32>
    %78 = tpu.matmul %76, %13, %cst_26 {dimension_numbers = #tpu.dot_dimension_numbers<[1], [0], [0], [1], [0, 0, 1, 1], [], []>} : vector<2x32xf32>, vector<32x128xf32>, vector<2x128xf32> -> vector<2x128xf32>
    %79 = arith.addf %77, %78 : vector<2x128xf32>
    %80 = arith.negf %79 : vector<2x128xf32>
    %81 = math.exp %80 : vector<2x128xf32>
    %cst_27 = arith.constant 1.000000e+00 : f32
    %82 = vector.broadcast %cst_27 : f32 to vector<2x128xf32>
    %83 = arith.addf %82, %81 : vector<2x128xf32>
    %84 = arith.divf %82, %83 : vector<2x128xf32>
    %85 = math.tanh %79 : vector<2x128xf32>
    %86 = vector.extract_strided_slice %84 {offsets = [0, 0], sizes = [2, 32], strides = [1, 1]} : vector<2x128xf32> to vector<2x32xf32>
    %87 = vector.extract_strided_slice %84 {offsets = [0, 32], sizes = [2, 32], strides = [1, 1]} : vector<2x128xf32> to vector<2x32xf32>
    %88 = vector.extract_strided_slice %85 {offsets = [0, 64], sizes = [2, 32], strides = [1, 1]} : vector<2x128xf32> to vector<2x32xf32>
    %89 = vector.extract_strided_slice %84 {offsets = [0, 96], sizes = [2, 32], strides = [1, 1]} : vector<2x128xf32> to vector<2x32xf32>
    %90 = arith.mulf %87, %74 : vector<2x32xf32>
    %91 = arith.mulf %86, %88 : vector<2x32xf32>
    %92 = arith.addf %90, %91 : vector<2x32xf32>
    %93 = math.tanh %92 : vector<2x32xf32>
    %94 = arith.mulf %89, %93 : vector<2x32xf32>
    %95 = vector.extract_strided_slice %18 {offsets = [8, 0], sizes = [2, 128], strides = [1, 1]} : vector<16x128xf32> to vector<2x128xf32>
    %cst_28 = arith.constant dense<0.000000e+00> : vector<2x128xf32>
    %96 = tpu.matmul %94, %13, %cst_28 {dimension_numbers = #tpu.dot_dimension_numbers<[1], [0], [0], [1], [0, 0, 1, 1], [], []>} : vector<2x32xf32>, vector<32x128xf32>, vector<2x128xf32> -> vector<2x128xf32>
    %97 = arith.addf %95, %96 : vector<2x128xf32>
    %98 = arith.negf %97 : vector<2x128xf32>
    %99 = math.exp %98 : vector<2x128xf32>
    %cst_29 = arith.constant 1.000000e+00 : f32
    %100 = vector.broadcast %cst_29 : f32 to vector<2x128xf32>
    %101 = arith.addf %100, %99 : vector<2x128xf32>
    %102 = arith.divf %100, %101 : vector<2x128xf32>
    %103 = math.tanh %97 : vector<2x128xf32>
    %104 = vector.extract_strided_slice %102 {offsets = [0, 0], sizes = [2, 32], strides = [1, 1]} : vector<2x128xf32> to vector<2x32xf32>
    %105 = vector.extract_strided_slice %102 {offsets = [0, 32], sizes = [2, 32], strides = [1, 1]} : vector<2x128xf32> to vector<2x32xf32>
    %106 = vector.extract_strided_slice %103 {offsets = [0, 64], sizes = [2, 32], strides = [1, 1]} : vector<2x128xf32> to vector<2x32xf32>
    %107 = vector.extract_strided_slice %102 {offsets = [0, 96], sizes = [2, 32], strides = [1, 1]} : vector<2x128xf32> to vector<2x32xf32>
    %108 = arith.mulf %105, %92 : vector<2x32xf32>
    %109 = arith.mulf %104, %106 : vector<2x32xf32>
    %110 = arith.addf %108, %109 : vector<2x32xf32>
    %111 = math.tanh %110 : vector<2x32xf32>
    %112 = arith.mulf %107, %111 : vector<2x32xf32>
    %113 = vector.extract_strided_slice %18 {offsets = [10, 0], sizes = [2, 128], strides = [1, 1]} : vector<16x128xf32> to vector<2x128xf32>
    %cst_30 = arith.constant dense<0.000000e+00> : vector<2x128xf32>
    %114 = tpu.matmul %112, %13, %cst_30 {dimension_numbers = #tpu.dot_dimension_numbers<[1], [0], [0], [1], [0, 0, 1, 1], [], []>} : vector<2x32xf32>, vector<32x128xf32>, vector<2x128xf32> -> vector<2x128xf32>
    %115 = arith.addf %113, %114 : vector<2x128xf32>
    %116 = arith.negf %115 : vector<2x128xf32>
    %117 = math.exp %116 : vector<2x128xf32>
    %cst_31 = arith.constant 1.000000e+00 : f32
    %118 = vector.broadcast %cst_31 : f32 to vector<2x128xf32>
    %119 = arith.addf %118, %117 : vector<2x128xf32>
    %120 = arith.divf %118, %119 : vector<2x128xf32>
    %121 = math.tanh %115 : vector<2x128xf32>
    %122 = vector.extract_strided_slice %120 {offsets = [0, 0], sizes = [2, 32], strides = [1, 1]} : vector<2x128xf32> to vector<2x32xf32>
    %123 = vector.extract_strided_slice %120 {offsets = [0, 32], sizes = [2, 32], strides = [1, 1]} : vector<2x128xf32> to vector<2x32xf32>
    %124 = vector.extract_strided_slice %121 {offsets = [0, 64], sizes = [2, 32], strides = [1, 1]} : vector<2x128xf32> to vector<2x32xf32>
    %125 = vector.extract_strided_slice %120 {offsets = [0, 96], sizes = [2, 32], strides = [1, 1]} : vector<2x128xf32> to vector<2x32xf32>
    %126 = arith.mulf %123, %110 : vector<2x32xf32>
    %127 = arith.mulf %122, %124 : vector<2x32xf32>
    %128 = arith.addf %126, %127 : vector<2x32xf32>
    %129 = math.tanh %128 : vector<2x32xf32>
    %130 = arith.mulf %125, %129 : vector<2x32xf32>
    %131 = vector.extract_strided_slice %18 {offsets = [12, 0], sizes = [2, 128], strides = [1, 1]} : vector<16x128xf32> to vector<2x128xf32>
    %cst_32 = arith.constant dense<0.000000e+00> : vector<2x128xf32>
    %132 = tpu.matmul %130, %13, %cst_32 {dimension_numbers = #tpu.dot_dimension_numbers<[1], [0], [0], [1], [0, 0, 1, 1], [], []>} : vector<2x32xf32>, vector<32x128xf32>, vector<2x128xf32> -> vector<2x128xf32>
    %133 = arith.addf %131, %132 : vector<2x128xf32>
    %134 = arith.negf %133 : vector<2x128xf32>
    %135 = math.exp %134 : vector<2x128xf32>
    %cst_33 = arith.constant 1.000000e+00 : f32
    %136 = vector.broadcast %cst_33 : f32 to vector<2x128xf32>
    %137 = arith.addf %136, %135 : vector<2x128xf32>
    %138 = arith.divf %136, %137 : vector<2x128xf32>
    %139 = math.tanh %133 : vector<2x128xf32>
    %140 = vector.extract_strided_slice %138 {offsets = [0, 0], sizes = [2, 32], strides = [1, 1]} : vector<2x128xf32> to vector<2x32xf32>
    %141 = vector.extract_strided_slice %138 {offsets = [0, 32], sizes = [2, 32], strides = [1, 1]} : vector<2x128xf32> to vector<2x32xf32>
    %142 = vector.extract_strided_slice %139 {offsets = [0, 64], sizes = [2, 32], strides = [1, 1]} : vector<2x128xf32> to vector<2x32xf32>
    %143 = vector.extract_strided_slice %138 {offsets = [0, 96], sizes = [2, 32], strides = [1, 1]} : vector<2x128xf32> to vector<2x32xf32>
    %144 = arith.mulf %141, %128 : vector<2x32xf32>
    %145 = arith.mulf %140, %142 : vector<2x32xf32>
    %146 = arith.addf %144, %145 : vector<2x32xf32>
    %147 = math.tanh %146 : vector<2x32xf32>
    %148 = arith.mulf %143, %147 : vector<2x32xf32>
    %149 = vector.extract_strided_slice %18 {offsets = [14, 0], sizes = [2, 128], strides = [1, 1]} : vector<16x128xf32> to vector<2x128xf32>
    %cst_34 = arith.constant dense<0.000000e+00> : vector<2x128xf32>
    %150 = tpu.matmul %148, %13, %cst_34 {dimension_numbers = #tpu.dot_dimension_numbers<[1], [0], [0], [1], [0, 0, 1, 1], [], []>} : vector<2x32xf32>, vector<32x128xf32>, vector<2x128xf32> -> vector<2x128xf32>
    %151 = arith.addf %149, %150 : vector<2x128xf32>
    %152 = arith.negf %151 : vector<2x128xf32>
    %153 = math.exp %152 : vector<2x128xf32>
    %cst_35 = arith.constant 1.000000e+00 : f32
    %154 = vector.broadcast %cst_35 : f32 to vector<2x128xf32>
    %155 = arith.addf %154, %153 : vector<2x128xf32>
    %156 = arith.divf %154, %155 : vector<2x128xf32>
    %157 = math.tanh %151 : vector<2x128xf32>
    %158 = vector.extract_strided_slice %156 {offsets = [0, 0], sizes = [2, 32], strides = [1, 1]} : vector<2x128xf32> to vector<2x32xf32>
    %159 = vector.extract_strided_slice %156 {offsets = [0, 32], sizes = [2, 32], strides = [1, 1]} : vector<2x128xf32> to vector<2x32xf32>
    %160 = vector.extract_strided_slice %157 {offsets = [0, 64], sizes = [2, 32], strides = [1, 1]} : vector<2x128xf32> to vector<2x32xf32>
    %161 = vector.extract_strided_slice %156 {offsets = [0, 96], sizes = [2, 32], strides = [1, 1]} : vector<2x128xf32> to vector<2x32xf32>
    %162 = arith.mulf %159, %146 : vector<2x32xf32>
    %163 = arith.mulf %158, %160 : vector<2x32xf32>
    %164 = arith.addf %162, %163 : vector<2x32xf32>
    %165 = math.tanh %164 : vector<2x32xf32>
    %166 = arith.mulf %161, %165 : vector<2x32xf32>
    %c0_36 = arith.constant 0 : index
    %c0_37 = arith.constant 0 : index
    %c0_38 = arith.constant 0 : index
    %167 = vector.load %arg10[%c0_36, %c0_37, %c0_38] : memref<2x2x32xf32, #tpu.memory_space<vmem>>, vector<1x2x32xf32>
    %168 = vector.shape_cast %167 : vector<1x2x32xf32> to vector<2x32xf32>
    %169 = vector.shape_cast %166 : vector<2x32xf32> to vector<1x2x32xf32>
    tpu.vector_store %arg10[%c0_36, %c0_37, %c0_38], %169 {strides = array<i32>} : memref<2x2x32xf32, #tpu.memory_space<vmem>>, vector<1x2x32xf32>,
    %c0_39 = arith.constant 0 : index
    %c0_40 = arith.constant 0 : index
    %c0_41 = arith.constant 0 : index
    %170 = vector.load %arg11[%c0_39, %c0_40, %c0_41] : memref<2x2x32xf32, #tpu.memory_space<vmem>>, vector<1x2x32xf32>
    %171 = vector.shape_cast %170 : vector<1x2x32xf32> to vector<2x32xf32>
    %172 = vector.shape_cast %164 : vector<2x32xf32> to vector<1x2x32xf32>
    tpu.vector_store %arg11[%c0_39, %c0_40, %c0_41], %172 {strides = array<i32>} : memref<2x2x32xf32, #tpu.memory_space<vmem>>, vector<1x2x32xf32>,
    %173 = tpu.concatenate %40, %58, %76, %94, %112, %130, %148, %166 in 0 : vector<2x32xf32>, vector<2x32xf32>, vector<2x32xf32>, vector<2x32xf32>, vector<2x32xf32>, vector<2x32xf32>, vector<2x32xf32>, vector<2x32xf32> -> vector<16x32xf32>
    %c1 = arith.constant 1 : index
    %c0_42 = arith.constant 0 : index
    %c0_43 = arith.constant 0 : index
    %174 = vector.load %arg2[%c1, %c0_42, %c0_43] : memref<2x32x128xf32, #tpu.memory_space<vmem>>, vector<1x32x128xf32>
    %175 = vector.shape_cast %174 : vector<1x32x128xf32> to vector<32x128xf32>
    %c1_44 = arith.constant 1 : index
    %c0_45 = arith.constant 0 : index
    %c0_46 = arith.constant 0 : index
    %176 = vector.load %arg3[%c1_44, %c0_45, %c0_46] : memref<2x32x128xf32, #tpu.memory_space<vmem>>, vector<1x32x128xf32>
    %177 = vector.shape_cast %176 : vector<1x32x128xf32> to vector<32x128xf32>
    %c1_47 = arith.constant 1 : index
    %c0_48 = arith.constant 0 : index
    %c0_49 = arith.constant 0 : index
    %178 = vector.load %arg4[%c1_47, %c0_48, %c0_49] : memref<2x1x128xf32, #tpu.memory_space<vmem>>, vector<1x1x128xf32>
    %179 = vector.shape_cast %178 : vector<1x1x128xf32> to vector<1x128xf32>
    %cst_50 = arith.constant dense<0.000000e+00> : vector<16x128xf32>
    %180 = tpu.matmul %173, %175, %cst_50 {dimension_numbers = #tpu.dot_dimension_numbers<[1], [0], [0], [1], [0, 0, 1, 1], [], []>} : vector<16x32xf32>, vector<32x128xf32>, vector<16x128xf32> -> vector<16x128xf32>
    %181 = vector.broadcast %179 : vector<1x128xf32> to vector<16x128xf32>
    %182 = arith.addf %180, %181 : vector<16x128xf32>
    %c1_51 = arith.constant 1 : index
    %c0_52 = arith.constant 0 : index
    %c0_53 = arith.constant 0 : index
    %183 = vector.load %arg5[%c1_51, %c0_52, %c0_53] : memref<2x2x32xf32, #tpu.memory_space<vmem>>, vector<1x2x32xf32>
    %184 = vector.shape_cast %183 : vector<1x2x32xf32> to vector<2x32xf32>
    %c1_54 = arith.constant 1 : index
    %c0_55 = arith.constant 0 : index
    %c0_56 = arith.constant 0 : index
    %185 = vector.load %arg6[%c1_54, %c0_55, %c0_56] : memref<2x2x32xf32, #tpu.memory_space<vmem>>, vector<1x2x32xf32>
    %186 = vector.shape_cast %185 : vector<1x2x32xf32> to vector<2x32xf32>
    %187 = vector.extract_strided_slice %182 {offsets = [0, 0], sizes = [2, 128], strides = [1, 1]} : vector<16x128xf32> to vector<2x128xf32>
    %cst_57 = arith.constant dense<0.000000e+00> : vector<2x128xf32>
    %188 = tpu.matmul %184, %177, %cst_57 {dimension_numbers = #tpu.dot_dimension_numbers<[1], [0], [0], [1], [0, 0, 1, 1], [], []>} : vector<2x32xf32>, vector<32x128xf32>, vector<2x128xf32> -> vector<2x128xf32>
    %189 = arith.addf %187, %188 : vector<2x128xf32>
    %190 = arith.negf %189 : vector<2x128xf32>
    %191 = math.exp %190 : vector<2x128xf32>
    %cst_58 = arith.constant 1.000000e+00 : f32
    %192 = vector.broadcast %cst_58 : f32 to vector<2x128xf32>
    %193 = arith.addf %192, %191 : vector<2x128xf32>
    %194 = arith.divf %192, %193 : vector<2x128xf32>
    %195 = math.tanh %189 : vector<2x128xf32>
    %196 = vector.extract_strided_slice %194 {offsets = [0, 0], sizes = [2, 32], strides = [1, 1]} : vector<2x128xf32> to vector<2x32xf32>
    %197 = vector.extract_strided_slice %194 {offsets = [0, 32], sizes = [2, 32], strides = [1, 1]} : vector<2x128xf32> to vector<2x32xf32>
    %198 = vector.extract_strided_slice %195 {offsets = [0, 64], sizes = [2, 32], strides = [1, 1]} : vector<2x128xf32> to vector<2x32xf32>
    %199 = vector.extract_strided_slice %194 {offsets = [0, 96], sizes = [2, 32], strides = [1, 1]} : vector<2x128xf32> to vector<2x32xf32>
    %200 = arith.mulf %197, %186 : vector<2x32xf32>
    %201 = arith.mulf %196, %198 : vector<2x32xf32>
    %202 = arith.addf %200, %201 : vector<2x32xf32>
    %203 = math.tanh %202 : vector<2x32xf32>
    %204 = arith.mulf %199, %203 : vector<2x32xf32>
    %205 = vector.extract_strided_slice %182 {offsets = [2, 0], sizes = [2, 128], strides = [1, 1]} : vector<16x128xf32> to vector<2x128xf32>
    %cst_59 = arith.constant dense<0.000000e+00> : vector<2x128xf32>
    %206 = tpu.matmul %204, %177, %cst_59 {dimension_numbers = #tpu.dot_dimension_numbers<[1], [0], [0], [1], [0, 0, 1, 1], [], []>} : vector<2x32xf32>, vector<32x128xf32>, vector<2x128xf32> -> vector<2x128xf32>
    %207 = arith.addf %205, %206 : vector<2x128xf32>
    %208 = arith.negf %207 : vector<2x128xf32>
    %209 = math.exp %208 : vector<2x128xf32>
    %cst_60 = arith.constant 1.000000e+00 : f32
    %210 = vector.broadcast %cst_60 : f32 to vector<2x128xf32>
    %211 = arith.addf %210, %209 : vector<2x128xf32>
    %212 = arith.divf %210, %211 : vector<2x128xf32>
    %213 = math.tanh %207 : vector<2x128xf32>
    %214 = vector.extract_strided_slice %212 {offsets = [0, 0], sizes = [2, 32], strides = [1, 1]} : vector<2x128xf32> to vector<2x32xf32>
    %215 = vector.extract_strided_slice %212 {offsets = [0, 32], sizes = [2, 32], strides = [1, 1]} : vector<2x128xf32> to vector<2x32xf32>
    %216 = vector.extract_strided_slice %213 {offsets = [0, 64], sizes = [2, 32], strides = [1, 1]} : vector<2x128xf32> to vector<2x32xf32>
    %217 = vector.extract_strided_slice %212 {offsets = [0, 96], sizes = [2, 32], strides = [1, 1]} : vector<2x128xf32> to vector<2x32xf32>
    %218 = arith.mulf %215, %202 : vector<2x32xf32>
    %219 = arith.mulf %214, %216 : vector<2x32xf32>
    %220 = arith.addf %218, %219 : vector<2x32xf32>
    %221 = math.tanh %220 : vector<2x32xf32>
    %222 = arith.mulf %217, %221 : vector<2x32xf32>
    %223 = vector.extract_strided_slice %182 {offsets = [4, 0], sizes = [2, 128], strides = [1, 1]} : vector<16x128xf32> to vector<2x128xf32>
    %cst_61 = arith.constant dense<0.000000e+00> : vector<2x128xf32>
    %224 = tpu.matmul %222, %177, %cst_61 {dimension_numbers = #tpu.dot_dimension_numbers<[1], [0], [0], [1], [0, 0, 1, 1], [], []>} : vector<2x32xf32>, vector<32x128xf32>, vector<2x128xf32> -> vector<2x128xf32>
    %225 = arith.addf %223, %224 : vector<2x128xf32>
    %226 = arith.negf %225 : vector<2x128xf32>
    %227 = math.exp %226 : vector<2x128xf32>
    %cst_62 = arith.constant 1.000000e+00 : f32
    %228 = vector.broadcast %cst_62 : f32 to vector<2x128xf32>
    %229 = arith.addf %228, %227 : vector<2x128xf32>
    %230 = arith.divf %228, %229 : vector<2x128xf32>
    %231 = math.tanh %225 : vector<2x128xf32>
    %232 = vector.extract_strided_slice %230 {offsets = [0, 0], sizes = [2, 32], strides = [1, 1]} : vector<2x128xf32> to vector<2x32xf32>
    %233 = vector.extract_strided_slice %230 {offsets = [0, 32], sizes = [2, 32], strides = [1, 1]} : vector<2x128xf32> to vector<2x32xf32>
    %234 = vector.extract_strided_slice %231 {offsets = [0, 64], sizes = [2, 32], strides = [1, 1]} : vector<2x128xf32> to vector<2x32xf32>
    %235 = vector.extract_strided_slice %230 {offsets = [0, 96], sizes = [2, 32], strides = [1, 1]} : vector<2x128xf32> to vector<2x32xf32>
    %236 = arith.mulf %233, %220 : vector<2x32xf32>
    %237 = arith.mulf %232, %234 : vector<2x32xf32>
    %238 = arith.addf %236, %237 : vector<2x32xf32>
    %239 = math.tanh %238 : vector<2x32xf32>
    %240 = arith.mulf %235, %239 : vector<2x32xf32>
    %241 = vector.extract_strided_slice %182 {offsets = [6, 0], sizes = [2, 128], strides = [1, 1]} : vector<16x128xf32> to vector<2x128xf32>
    %cst_63 = arith.constant dense<0.000000e+00> : vector<2x128xf32>
    %242 = tpu.matmul %240, %177, %cst_63 {dimension_numbers = #tpu.dot_dimension_numbers<[1], [0], [0], [1], [0, 0, 1, 1], [], []>} : vector<2x32xf32>, vector<32x128xf32>, vector<2x128xf32> -> vector<2x128xf32>
    %243 = arith.addf %241, %242 : vector<2x128xf32>
    %244 = arith.negf %243 : vector<2x128xf32>
    %245 = math.exp %244 : vector<2x128xf32>
    %cst_64 = arith.constant 1.000000e+00 : f32
    %246 = vector.broadcast %cst_64 : f32 to vector<2x128xf32>
    %247 = arith.addf %246, %245 : vector<2x128xf32>
    %248 = arith.divf %246, %247 : vector<2x128xf32>
    %249 = math.tanh %243 : vector<2x128xf32>
    %250 = vector.extract_strided_slice %248 {offsets = [0, 0], sizes = [2, 32], strides = [1, 1]} : vector<2x128xf32> to vector<2x32xf32>
    %251 = vector.extract_strided_slice %248 {offsets = [0, 32], sizes = [2, 32], strides = [1, 1]} : vector<2x128xf32> to vector<2x32xf32>
    %252 = vector.extract_strided_slice %249 {offsets = [0, 64], sizes = [2, 32], strides = [1, 1]} : vector<2x128xf32> to vector<2x32xf32>
    %253 = vector.extract_strided_slice %248 {offsets = [0, 96], sizes = [2, 32], strides = [1, 1]} : vector<2x128xf32> to vector<2x32xf32>
    %254 = arith.mulf %251, %238 : vector<2x32xf32>
    %255 = arith.mulf %250, %252 : vector<2x32xf32>
    %256 = arith.addf %254, %255 : vector<2x32xf32>
    %257 = math.tanh %256 : vector<2x32xf32>
    %258 = arith.mulf %253, %257 : vector<2x32xf32>
    %259 = vector.extract_strided_slice %182 {offsets = [8, 0], sizes = [2, 128], strides = [1, 1]} : vector<16x128xf32> to vector<2x128xf32>
    %cst_65 = arith.constant dense<0.000000e+00> : vector<2x128xf32>
    %260 = tpu.matmul %258, %177, %cst_65 {dimension_numbers = #tpu.dot_dimension_numbers<[1], [0], [0], [1], [0, 0, 1, 1], [], []>} : vector<2x32xf32>, vector<32x128xf32>, vector<2x128xf32> -> vector<2x128xf32>
    %261 = arith.addf %259, %260 : vector<2x128xf32>
    %262 = arith.negf %261 : vector<2x128xf32>
    %263 = math.exp %262 : vector<2x128xf32>
    %cst_66 = arith.constant 1.000000e+00 : f32
    %264 = vector.broadcast %cst_66 : f32 to vector<2x128xf32>
    %265 = arith.addf %264, %263 : vector<2x128xf32>
    %266 = arith.divf %264, %265 : vector<2x128xf32>
    %267 = math.tanh %261 : vector<2x128xf32>
    %268 = vector.extract_strided_slice %266 {offsets = [0, 0], sizes = [2, 32], strides = [1, 1]} : vector<2x128xf32> to vector<2x32xf32>
    %269 = vector.extract_strided_slice %266 {offsets = [0, 32], sizes = [2, 32], strides = [1, 1]} : vector<2x128xf32> to vector<2x32xf32>
    %270 = vector.extract_strided_slice %267 {offsets = [0, 64], sizes = [2, 32], strides = [1, 1]} : vector<2x128xf32> to vector<2x32xf32>
    %271 = vector.extract_strided_slice %266 {offsets = [0, 96], sizes = [2, 32], strides = [1, 1]} : vector<2x128xf32> to vector<2x32xf32>
    %272 = arith.mulf %269, %256 : vector<2x32xf32>
    %273 = arith.mulf %268, %270 : vector<2x32xf32>
    %274 = arith.addf %272, %273 : vector<2x32xf32>
    %275 = math.tanh %274 : vector<2x32xf32>
    %276 = arith.mulf %271, %275 : vector<2x32xf32>
    %277 = vector.extract_strided_slice %182 {offsets = [10, 0], sizes = [2, 128], strides = [1, 1]} : vector<16x128xf32> to vector<2x128xf32>
    %cst_67 = arith.constant dense<0.000000e+00> : vector<2x128xf32>
    %278 = tpu.matmul %276, %177, %cst_67 {dimension_numbers = #tpu.dot_dimension_numbers<[1], [0], [0], [1], [0, 0, 1, 1], [], []>} : vector<2x32xf32>, vector<32x128xf32>, vector<2x128xf32> -> vector<2x128xf32>
    %279 = arith.addf %277, %278 : vector<2x128xf32>
    %280 = arith.negf %279 : vector<2x128xf32>
    %281 = math.exp %280 : vector<2x128xf32>
    %cst_68 = arith.constant 1.000000e+00 : f32
    %282 = vector.broadcast %cst_68 : f32 to vector<2x128xf32>
    %283 = arith.addf %282, %281 : vector<2x128xf32>
    %284 = arith.divf %282, %283 : vector<2x128xf32>
    %285 = math.tanh %279 : vector<2x128xf32>
    %286 = vector.extract_strided_slice %284 {offsets = [0, 0], sizes = [2, 32], strides = [1, 1]} : vector<2x128xf32> to vector<2x32xf32>
    %287 = vector.extract_strided_slice %284 {offsets = [0, 32], sizes = [2, 32], strides = [1, 1]} : vector<2x128xf32> to vector<2x32xf32>
    %288 = vector.extract_strided_slice %285 {offsets = [0, 64], sizes = [2, 32], strides = [1, 1]} : vector<2x128xf32> to vector<2x32xf32>
    %289 = vector.extract_strided_slice %284 {offsets = [0, 96], sizes = [2, 32], strides = [1, 1]} : vector<2x128xf32> to vector<2x32xf32>
    %290 = arith.mulf %287, %274 : vector<2x32xf32>
    %291 = arith.mulf %286, %288 : vector<2x32xf32>
    %292 = arith.addf %290, %291 : vector<2x32xf32>
    %293 = math.tanh %292 : vector<2x32xf32>
    %294 = arith.mulf %289, %293 : vector<2x32xf32>
    %295 = vector.extract_strided_slice %182 {offsets = [12, 0], sizes = [2, 128], strides = [1, 1]} : vector<16x128xf32> to vector<2x128xf32>
    %cst_69 = arith.constant dense<0.000000e+00> : vector<2x128xf32>
    %296 = tpu.matmul %294, %177, %cst_69 {dimension_numbers = #tpu.dot_dimension_numbers<[1], [0], [0], [1], [0, 0, 1, 1], [], []>} : vector<2x32xf32>, vector<32x128xf32>, vector<2x128xf32> -> vector<2x128xf32>
    %297 = arith.addf %295, %296 : vector<2x128xf32>
    %298 = arith.negf %297 : vector<2x128xf32>
    %299 = math.exp %298 : vector<2x128xf32>
    %cst_70 = arith.constant 1.000000e+00 : f32
    %300 = vector.broadcast %cst_70 : f32 to vector<2x128xf32>
    %301 = arith.addf %300, %299 : vector<2x128xf32>
    %302 = arith.divf %300, %301 : vector<2x128xf32>
    %303 = math.tanh %297 : vector<2x128xf32>
    %304 = vector.extract_strided_slice %302 {offsets = [0, 0], sizes = [2, 32], strides = [1, 1]} : vector<2x128xf32> to vector<2x32xf32>
    %305 = vector.extract_strided_slice %302 {offsets = [0, 32], sizes = [2, 32], strides = [1, 1]} : vector<2x128xf32> to vector<2x32xf32>
    %306 = vector.extract_strided_slice %303 {offsets = [0, 64], sizes = [2, 32], strides = [1, 1]} : vector<2x128xf32> to vector<2x32xf32>
    %307 = vector.extract_strided_slice %302 {offsets = [0, 96], sizes = [2, 32], strides = [1, 1]} : vector<2x128xf32> to vector<2x32xf32>
    %308 = arith.mulf %305, %292 : vector<2x32xf32>
    %309 = arith.mulf %304, %306 : vector<2x32xf32>
    %310 = arith.addf %308, %309 : vector<2x32xf32>
    %311 = math.tanh %310 : vector<2x32xf32>
    %312 = arith.mulf %307, %311 : vector<2x32xf32>
    %313 = vector.extract_strided_slice %182 {offsets = [14, 0], sizes = [2, 128], strides = [1, 1]} : vector<16x128xf32> to vector<2x128xf32>
    %cst_71 = arith.constant dense<0.000000e+00> : vector<2x128xf32>
    %314 = tpu.matmul %312, %177, %cst_71 {dimension_numbers = #tpu.dot_dimension_numbers<[1], [0], [0], [1], [0, 0, 1, 1], [], []>} : vector<2x32xf32>, vector<32x128xf32>, vector<2x128xf32> -> vector<2x128xf32>
    %315 = arith.addf %313, %314 : vector<2x128xf32>
    %316 = arith.negf %315 : vector<2x128xf32>
    %317 = math.exp %316 : vector<2x128xf32>
    %cst_72 = arith.constant 1.000000e+00 : f32
    %318 = vector.broadcast %cst_72 : f32 to vector<2x128xf32>
    %319 = arith.addf %318, %317 : vector<2x128xf32>
    %320 = arith.divf %318, %319 : vector<2x128xf32>
    %321 = math.tanh %315 : vector<2x128xf32>
    %322 = vector.extract_strided_slice %320 {offsets = [0, 0], sizes = [2, 32], strides = [1, 1]} : vector<2x128xf32> to vector<2x32xf32>
    %323 = vector.extract_strided_slice %320 {offsets = [0, 32], sizes = [2, 32], strides = [1, 1]} : vector<2x128xf32> to vector<2x32xf32>
    %324 = vector.extract_strided_slice %321 {offsets = [0, 64], sizes = [2, 32], strides = [1, 1]} : vector<2x128xf32> to vector<2x32xf32>
    %325 = vector.extract_strided_slice %320 {offsets = [0, 96], sizes = [2, 32], strides = [1, 1]} : vector<2x128xf32> to vector<2x32xf32>
    %326 = arith.mulf %323, %310 : vector<2x32xf32>
    %327 = arith.mulf %322, %324 : vector<2x32xf32>
    %328 = arith.addf %326, %327 : vector<2x32xf32>
    %329 = math.tanh %328 : vector<2x32xf32>
    %330 = arith.mulf %325, %329 : vector<2x32xf32>
    %c1_73 = arith.constant 1 : index
    %c0_74 = arith.constant 0 : index
    %c0_75 = arith.constant 0 : index
    %331 = vector.load %arg10[%c1_73, %c0_74, %c0_75] : memref<2x2x32xf32, #tpu.memory_space<vmem>>, vector<1x2x32xf32>
    %332 = vector.shape_cast %331 : vector<1x2x32xf32> to vector<2x32xf32>
    %333 = vector.shape_cast %330 : vector<2x32xf32> to vector<1x2x32xf32>
    tpu.vector_store %arg10[%c1_73, %c0_74, %c0_75], %333 {strides = array<i32>} : memref<2x2x32xf32, #tpu.memory_space<vmem>>, vector<1x2x32xf32>,
    %c1_76 = arith.constant 1 : index
    %c0_77 = arith.constant 0 : index
    %c0_78 = arith.constant 0 : index
    %334 = vector.load %arg11[%c1_76, %c0_77, %c0_78] : memref<2x2x32xf32, #tpu.memory_space<vmem>>, vector<1x2x32xf32>
    %335 = vector.shape_cast %334 : vector<1x2x32xf32> to vector<2x32xf32>
    %336 = vector.shape_cast %328 : vector<2x32xf32> to vector<1x2x32xf32>
    tpu.vector_store %arg11[%c1_76, %c0_77, %c0_78], %336 {strides = array<i32>} : memref<2x2x32xf32, #tpu.memory_space<vmem>>, vector<1x2x32xf32>,
    %c0_79 = arith.constant 0 : index
    %c0_80 = arith.constant 0 : index
    %337 = vector.load %arg7[%c0_79, %c0_80] : memref<32x64xf32, #tpu.memory_space<vmem>>, vector<32x64xf32>
    %cst_81 = arith.constant dense<0.000000e+00> : vector<2x64xf32>
    %338 = tpu.matmul %204, %337, %cst_81 {dimension_numbers = #tpu.dot_dimension_numbers<[1], [0], [0], [1], [0, 0, 1, 1], [], []>} : vector<2x32xf32>, vector<32x64xf32>, vector<2x64xf32> -> vector<2x64xf32>
    %c0_82 = arith.constant 0 : index
    %c0_83 = arith.constant 0 : index
    %339 = vector.load %arg8[%c0_82, %c0_83] : memref<1x64xf32, #tpu.memory_space<vmem>>, vector<1x64xf32>
    %340 = vector.broadcast %339 : vector<1x64xf32> to vector<2x64xf32>
    %341 = arith.addf %338, %340 : vector<2x64xf32>
    %cst_84 = arith.constant dense<0xFF800000> : vector<2xf32>
    %342 = vector.multi_reduction <maximumf>, %341, %cst_84 [1] : vector<2x64xf32> to vector<2xf32>
    %343 = vector.shape_cast %342 : vector<2xf32> to vector<2x1xf32>
    %344 = vector.broadcast %343 : vector<2x1xf32> to vector<2x64xf32>
    %345 = arith.subf %341, %344 : vector<2x64xf32>
    %346 = math.exp %345 : vector<2x64xf32>
    %cst_85 = arith.constant dense<0.000000e+00> : vector<2xf32>
    %347 = vector.multi_reduction <add>, %346, %cst_85 [1] : vector<2x64xf32> to vector<2xf32>
    %348 = vector.shape_cast %347 : vector<2xf32> to vector<2x1xf32>
    %349 = math.log %348 : vector<2x1xf32>
    %350 = arith.addf %343, %349 : vector<2x1xf32>
    %351 = vector.broadcast %350 : vector<2x1xf32> to vector<2x64xf32>
    %352 = arith.subf %341, %351 : vector<2x64xf32>
    %c0_86 = arith.constant 0 : index
    %c0_87 = arith.constant 0 : index
    %353 = vector.load %arg9[%c0_86, %c0_87] : memref<2x64xf32, #tpu.memory_space<vmem>>, vector<2x64xf32>
    tpu.vector_store %arg9[%c0_86, %c0_87], %352 {strides = array<i32>} : memref<2x64xf32, #tpu.memory_space<vmem>>, vector<2x64xf32>,
    return
  }
}

</mosaic_0001>

<bundles_post_ra>
// kernel: decoder_forward.1
= control target key start
LH: loop header
LB: loop body
LE: loop exit
PB: predicated region body
PF: predicated region fallthrough
CT: control target
= control target key end

     0   :  { %17 = vsyncpa [#allocation3], 0  ;;  %s3377_s0 = inlined_call_operand.vmem [shape: s32[16,1], index: 0, kind: input, shape index: {}]   ;;  %s3378_s1 = inlined_call_operand.vmem [shape: f32[64,32], index: 1, kind: input, shape index: {}]   ;;  %s3379_s2 = inlined_call_operand.vmem [shape: f32[2,32,128], index: 2, kind: input, shape index: {}]   ;;  %s3380_s3 = inlined_call_operand.vmem [shape: f32[2,32,128], index: 3, kind: input, shape index: {}]   ;;  %s3381_s4 = inlined_call_operand.vmem [shape: f32[2,1,128], index: 4, kind: input, shape index: {}]   ;;  %s3382_s5 = inlined_call_operand.vmem [shape: f32[2,2,32], index: 5, kind: input, shape index: {}]   ;;  %s3383_s6 = inlined_call_operand.vmem [shape: f32[2,2,32], index: 6, kind: input, shape index: {}]   ;;  %s3384_s7 = inlined_call_operand.hbm [shape: f32[32,64], index: 7, kind: input, shape index: {}]   ;;  %s3385_s8 = inlined_call_operand.vmem [shape: f32[1,64], index: 8, kind: input, shape index: {}]   ;;  %s3386_s9 = inlined_call_operand.hbm [shape: f32[2,64], index: 9, kind: output, shape index: {0}]   ;;  %s3387_s10 = inlined_call_operand.hbm [shape: f32[2,2,32], index: 10, kind: output, shape index: {1}]   ;;  %s3388_s11 = inlined_call_operand.hbm [shape: f32[2,2,32], index: 11, kind: output, shape index: {2}]  }
   0x1   :  { %18 = vsyncpa [#allocation4], 0 }
   0x2   :  { %19 = vsyncpa [#allocation7], 0  ;;  %s2853_s17 = smov [#allocation2]  }
   0x3   :  { %s39_s18 = sshll.u32 %s2853_s17, 4  ;;  %s40_s18 = int_to_ptr.vmem [resolvable:$true] %s39_s18 }
   0x4   :  { %s2775_s19 = scalar_lea.vmem %s40_s18, 512  ;;  %p2780_p1 = scmp.lt.s32.totalorder %s40_s18, %s40_s18 }
   0x5   :  { %p2776_p0 = scmp.ne.s32.totalorder %s40_s18, %s2775_s19  ;;  %p2781_p2 = scmp.lt.s32.totalorder %s2775_s19, %s2775_s19 }
   0x7   :  { %p2782_p3 = por %p2781_p2, %p2780_p1 }
   0x9   :  { %p2783_p4 = pnand %p2782_p3, %p2776_p0 }
   0xb   :  { %2786 = shalt.err (!%p2783_p4)
}
   0xc   :  { %s2854_s20 = smov 128   ;;  %s2855_s21 = smov 8  }
   0xd   :  { %45 = dma.hbm_to_vmem [thread:$0]  %s3384_s7, 512, %s40_s18, [#allocation3], %s2854_s20, %s2854_s20, %s2855_s21  }
   0xe   :  { %2847 = dma.done.wait [#allocation3], 512  }
   0xf   :  { %2848 = vsyncadd [#allocation3], 4294966784  ;;  %v2856_v0 = vmov 0   ;;  %v51_v1 = vld [vmem:[%s3377_s0] sm:$0xff]  ;;  %v74_v2 = vld [vmem:[%s3378_s1 + $0x38] sm:$0xff]  ;;  %v2857_v13 = vmov 0.0   ;;  %v53_v14 = vlaneseq }
  0x10   :  { %2634 = vset.pattern.permute.xlu0 %v2856_v0  ;;  %2393 = vmatprep.subr.mxu0 %v74_v2  ;;  %v73_v3 = vld [vmem:[%s3378_s1 + $0x30] sm:$0xff]  ;;  %v52_v4 = vld [vmem:[%s3377_s0 + $0x8] sm:$0xff]  ;;  %v162_v6 = vld [vmem:[%s3379_s2 + $0x18] sm:$0xff]  ;;  %vm75_vm0 = vcmask 523264   ;;  %vm2858_vm3 = vmmov 0   ;;  %vm174_vm4 = vcmask 261120  }
  0x11   :  { %56 = vperm.xlu0 %2634, %v51_v1   ;;  %2394 = vmatpush3.msra.mxu0 %v74_v2  ;;  %v72_v5 = vld [vmem:[%s3378_s1 + $0x28] sm:$0xff]  ;;  %v71_v7 = vld [vmem:[%s3378_s1 + $0x20] sm:$0xff]  ;;  %v161_v8 = vld [vmem:[%s3379_s2 + $0x10] sm:$0xff]  ;;  %v54_v15 = vand.u32 127, %v53_v14  ;;  %s2859_s21 = smov 64   ;;  %s2860_s24 = smov 32  }
  0x12   :  { %2395 = vmatprep.subr.mxu0 %v73_v3  ;;  %2412 = vmatprep.subr.mxu1 %v162_v6  ;;  %v70_v9 = vld [vmem:[%s3378_s1 + $0x18] sm:$0xff]  ;;  %v69_v10 = vld [vmem:[%s3378_s1 + $0x10] sm:$0xff]  ;;  %v68_v11 = vld [vmem:[%s3378_s1 + $0x8] sm:$0xff]  ;;  %vm1115_vm5 = vcmask 1041408   ;;  %vm1117_vm6 = vcmask 1043456   ;;  %vm1119_vm7 = vcmask 1045504  }
  0x13   :  { %2396 = vmatpush3.msra.mxu0 %v73_v3  ;;  %2413 = vmatpush3.msra.mxu1 %v162_v6  ;;  %v67_v12 = vld [vmem:[%s3378_s1] sm:$0xff]  ;;  %v160_v20 = vld [vmem:[%s3379_s2 + $0x8] sm:$0xff]  ;;  %v2978_v22 = vld [vmem:[%s3380_s3 + $0x18] sm:$0xff]  ;;  %vm2170_vm8 = vcmask 517120   ;;  %s2861_s23 = smov 96   ;;  %vm1108_vm9 = vcmask 261126  }
  0x14   :  { %2397 = vmatprep.subr.mxu0 %v72_v5  ;;  %2414 = vmatprep.subr.mxu1 %v161_v8  ;;  %v159_v21 = vld [vmem:[%s3379_s2] sm:$0xff]  ;;  %v2985_v23 = vld [vmem:[%s3380_s3 + $0x10] sm:$0xff]  ;;  %v2991_v24 = vld [vmem:[%s3380_s3 + $0x8] sm:$0xff] }
  0x15   :  { %59 = vperm.xlu0 %2634, %v52_v4   ;;  %2398 = vmatpush3.msra.mxu0 %v72_v5  ;;  %v2998_v25 = vld [vmem:[%s3380_s3] sm:$0xff] }
  0x16   :  { %2399 = vmatprep.subr.mxu0 %v71_v7  ;;  %2415 = vmatpush3.msra.mxu1 %v161_v8  ;;  %v256_v30 = vld [vmem:[%s3382_s5] sm:$0x3] }
  0x17   :  { %2400 = vmatpush3.msra.mxu0 %v71_v7  ;;  %2416 = vmatprep.subr.mxu1 %v160_v20  ;;  %v2235_v31 = vld [vmem:[%s3381_s4] ss:$0 sm:$0xff] }
  0x18   :  { %2401 = vmatprep.subr.mxu0 %v70_v9  ;;  %2417 = vmatpush3.msra.mxu1 %v160_v20  ;;  %v257_v40 = vld [vmem:[%s3383_s6] sm:$0x3] }
  0x19   :  { %2402 = vmatpush3.msra.mxu0 %v70_v9  ;;  %2418 = vmatprep.subr.mxu1 %v159_v21 }
  0x1a   :  { %2403 = vmatprep.subr.mxu0 %v69_v10  ;;  %2419 = vmatpush3.msra.mxu1 %v159_v21 }
  0x1b   :  { %2404 = vmatpush3.msra.mxu0 %v69_v10  ;;  %2423 = vmatprep.subr.mxu1 %v2857_v13 }
  0x1c   :  { %2405 = vmatprep.subr.mxu0 %v68_v11 }
  0x1d   :  { %2406 = vmatpush3.msra.mxu0 %v68_v11 }
  0x1e   :  { %2407 = vmatprep.subr.mxu0 %v67_v12 }
  0x1f   :  { %2408 = vmatpush3.msra.mxu0 %v67_v12 }
  0x20   :  { %2434 = vmatprep.subr.mxu0 %v2857_v13 }
  0x8c   :  { %v57_v16 = vpop.permute.xlu0 %56 }
  0x8d   :  { %vm61_vm1 = vcmp.eq.s32.totalorder %v57_v16, %v54_v15 }
  0x8e   :  { %v2231_v17 = vsel %vm61_vm1, 1.0, %v2857_v13 }
  0x8f   :  { %2409 = vmatprep.mubr.msk.f32.mxu0 %vm75_vm0, %v2231_v17 }
  0x90   :  { %v60_v18 = vpop.permute.xlu0 %59 }
  0x91   :  { %vm62_vm2 = vcmp.eq.s32.totalorder %v60_v18, %v54_v15 }
  0x92   :  { %v2232_v19 = vsel %vm62_vm2, 1.0, %v2857_v13 }
  0x93   :  { %2410 = vmatmul.mubr.msk.f32.vlgmr.msra.gmra.mxu0 %vm75_vm0, %v2232_v19 }
  0x94   :  { %2435 = vmatpush3.msra.mxu0 %v2978_v22  ;;  %2442 = vmatprep.mubr.msk.f32.mxu0 %vm2858_vm3, %v2857_v13 }
  0x95   :  { %2436 = vmatprep.subr.mxu0 %v2857_v13 }
  0x96   :  { %2437 = vmatpush3.msra.mxu0 %v2985_v23 }
  0x97   :  { %2438 = vmatprep.subr.mxu0 %v2857_v13 }
  0x98   :  { %2439 = vmatpush3.msra.mxu0 %v2991_v24 }
  0x99   :  { %2440 = vmatprep.subr.mxu0 %v2857_v13 }
  0x9a   :  { %2441 = vmatpush3.msra.mxu0 %v2998_v25 }
  0x9b   :  { %2456 = vmatprep.subr.mxu0 %v2857_v13 }
 0x153   :  { %v2411_v26 = vpop.f32.mrf.mxu0 }
 0x154   :  { %v158_v29 = vmax.f32 %v2411_v26, 0.0 }
 0x155   :  { %v148_v27 = vpop.f32.mrf.mxu0 }
 0x156   :  { %v157_v28 = vmax.f32 %v148_v27, 0.0 }
 0x158   :  { %2420 = vmatprep.mubr.msk.f32.mxu1 %vm174_vm4, %v157_v28 }
 0x159   :  { %2421 = vmatmul.mubr.msk.f32.vlgmr.msra.gmra.mxu1 %vm174_vm4, %v158_v29 }
 0x15a   :  { %2424 = vmatpush3.msra.mxu1 %v2978_v22  ;;  %2431 = vmatprep.mubr.msk.f32.mxu1 %vm2858_vm3, %v2857_v13 }
 0x15b   :  { %2425 = vmatprep.subr.mxu1 %v2857_v13 }
 0x15c   :  { %2426 = vmatpush3.msra.mxu1 %v2985_v23 }
 0x15d   :  { %2427 = vmatprep.subr.mxu1 %v2857_v13 }
 0x15e   :  { %2428 = vmatpush3.msra.mxu1 %v2991_v24 }
 0x15f   :  { %2429 = vmatprep.subr.mxu1 %v2857_v13 }
 0x160   :  { %2430 = vmatpush3.msra.mxu1 %v2998_v25 }
 0x161   :  { %2432 = vmatmul.mubr.msk.f32.vlgmr.msra.gmra.mxu1 %vm174_vm4, %v256_v30  ;;  %2445 = vmatprep.subr.mxu1 %v2857_v13 }
 0x162   :  { %2446 = vmatpush3.msra.mxu1 %v2978_v22  ;;  %2453 = vmatprep.mubr.msk.f32.mxu1 %vm2858_vm3, %v2857_v13 }
 0x163   :  { %2447 = vmatprep.subr.mxu1 %v2857_v13 }
 0x164   :  { %2448 = vmatpush3.msra.mxu1 %v2985_v23 }
 0x165   :  { %2449 = vmatprep.subr.mxu1 %v2857_v13 }
 0x166   :  { %2450 = vmatpush3.msra.mxu1 %v2991_v24 }
 0x167   :  { %2451 = vmatprep.subr.mxu1 %v2857_v13 }
 0x168   :  { %2452 = vmatpush3.msra.mxu1 %v2998_v25 }
 0x169   :  { %2467 = vmatprep.subr.mxu1 %v2857_v13 }
 0x219   :  { %v2422_v32 = vpop.f32.mrf.mxu1 }
 0x21a   :  { %v3034_v33 = vadd.f32 %v2422_v32, %v2235_v31 }
 0x21b   :  { %v247_v34 = vpop.f32.mrf.mxu1 }
 0x21c   :  { %v3036_v35 = vadd.f32 %v2235_v31, %v247_v34 }
 0x221   :  { %v327_v36 = vpop.f32.mrf.mxu1 }
 0x222   :  { %v331_v37 = vadd.f32 %v327_v36, %v3036_v35 }
 0x223   :  { %v2433_v38 = vpop.f32.mrf.mxu1 }
 0x224   :  { %2635 = vtanh.f32 %v331_v37  ;;  %v2239_v41 = vmul.f32 -1.442695, %v331_v37 }
 0x226   :  { %2637 = vpow2.f32 %v2239_v41 }
 0x231   :  { %v2636_v39 = vpop.eup %2635 }
 0x232   :  { %345 = vrot.lane.b32.xlu1 %v2636_v39, %s2859_s21 }
 0x233   :  { %v2638_v42 = vpop.eup %2637 }
 0x234   :  { %v335_v43 = vadd.f32 1.0, %v2638_v42 }
 0x236   :  { %340 = vrot.lane.b32.xlu1 %v257_v40, %s2860_s24  ;;  %2639 = vrcp.f32 %v335_v43 }
 0x243   :  { %v2640_v44 = vpop.eup %2639 }
 0x2a4   :  { %v346_v45 = vpop.permute.xlu1 %345 }
 0x2a5   :  { %v348_v46 = vmul.f32 %v2640_v44, %v346_v45 }
 0x2a7   :  { %350 = vrot.lane.b32.xlu0 %v348_v46, %s2860_s24 }
 0x2a8   :  { %v341_v47 = vpop.permute.xlu1 %340 }
 0x2a9   :  { %v343_v48 = vmul.f32 %v2640_v44, %v341_v47 }
 0x319   :  { %v351_v49 = vpop.permute.xlu0 %350 }
 0x31a   :  { %v353_v50 = vadd.f32 %v351_v49, %v343_v48 }
 0x31c   :  { %2641 = vtanh.f32 %v353_v50  ;;  %v447_v2 = vrot.slane %v353_v50, 6 }
 0x329   :  { %v2642_v51 = vpop.eup %2641 }
 0x32a   :  { %356 = vrot.lane.b32.xlu1 %v2642_v51, %s2859_s21 }
 0x39c   :  { %v357_v52 = vpop.permute.xlu1 %356 }
 0x39d   :  { %v3046_v53 = vmul.f32 %v2640_v44, %v357_v52 }
 0x39f   :  { %361 = vrot.lane.b32.xlu0 %v3046_v53, %s2860_s24 }
 0x411   :  { %v362_v54 = vpop.permute.xlu0 %361 }
 0x412   :  { %2443 = vmatmul.mubr.msk.f32.vlgmr.msra.gmra.mxu0 %vm174_vm4, %v362_v54 }
 0x413   :  { %2457 = vmatpush3.msra.mxu0 %v2978_v22  ;;  %2464 = vmatprep.mubr.msk.f32.mxu0 %vm2858_vm3, %v2857_v13 }
 0x414   :  { %2458 = vmatprep.subr.mxu0 %v2857_v13 }
 0x415   :  { %2459 = vmatpush3.msra.mxu0 %v2985_v23 }
 0x416   :  { %2460 = vmatprep.subr.mxu0 %v2857_v13 }
 0x417   :  { %2461 = vmatpush3.msra.mxu0 %v2991_v24 }
 0x418   :  { %2462 = vmatprep.subr.mxu0 %v2857_v13 }
 0x419   :  { %2463 = vmatpush3.msra.mxu0 %v2998_v25 }
 0x41a   :  { %2478 = vmatprep.subr.mxu0 %v2857_v13 }
 0x4d2   :  { %v431_v55 = vpop.f32.mrf.mxu0 }
 0x4d3   :  { %v436_v56 = vrot.slane %v431_v55, 6 }
 0x4d4   :  { %v2444_v57 = vpop.f32.mrf.mxu0 }
 0x4d5   :  { %v438_v58 = vadd.f32 %v436_v56, %v3036_v35 }
 0x4d7   :  { %2643 = vtanh.f32 %v438_v58  ;;  %v2241_v60 = vmul.f32 -1.442695, %v438_v58 }
 0x4d9   :  { %2645 = vpow2.f32 %v2241_v60 }
 0x4e4   :  { %v2644_v59 = vpop.eup %2643 }
 0x4e5   :  { %451 = vrot.lane.b32.xlu1 %v2644_v59, %s2859_s21 }
 0x4e6   :  { %v2646_v61 = vpop.eup %2645 }
 0x4e7   :  { %v442_v62 = vadd.f32 1.0, %v2646_v61 }
 0x4e9   :  { %2647 = vrcp.f32 %v442_v62 }
 0x4f6   :  { %v2648_v63 = vpop.eup %2647 }
 0x4f7   :  { %v449_v3 = vmul.f32 %v2648_v63, %v447_v2 }
 0x557   :  { %v452_v0 = vpop.permute.xlu1 %451 }
 0x558   :  { %v454_v1 = vmul.f32 %v2648_v63, %v452_v0 }
 0x55a   :  { %456 = vrot.lane.b32.xlu0 %v454_v1, %s2860_s24 }
 0x5cc   :  { %v457_v4 = vpop.permute.xlu0 %456 }
 0x5cd   :  { %v459_v5 = vadd.f32 %v457_v4, %v449_v3 }
 0x5cf   :  { %2649 = vtanh.f32 %v459_v5  ;;  %v554_v27 = vrot.slane %v459_v5, 6 }
 0x5dc   :  { %v2650_v6 = vpop.eup %2649 }
 0x5dd   :  { %462 = vrot.lane.b32.xlu1 %v2650_v6, %s2859_s21 }
 0x64f   :  { %v463_v7 = vpop.permute.xlu1 %462 }
 0x650   :  { %v465_v8 = vmul.f32 %v2648_v63, %v463_v7 }
 0x652   :  { %v467_v9 = vrot.slane %v465_v8, 2  ;;  %v1116_v36 = vsel %vm1115_vm5, %v3046_v53, %v465_v8 }
 0x654   :  { %468 = vrot.lane.b32.xlu0 %v467_v9, %s2860_s24 }
 0x6c6   :  { %v469_v10 = vpop.permute.xlu0 %468 }
 0x6c7   :  { %2454 = vmatmul.mubr.msk.f32.vlgmr.msra.gmra.mxu1 %vm174_vm4, %v469_v10 }
 0x6c8   :  { %2468 = vmatpush3.msra.mxu1 %v2978_v22  ;;  %2475 = vmatprep.mubr.msk.f32.mxu1 %vm2858_vm3, %v2857_v13 }
 0x6c9   :  { %2469 = vmatprep.subr.mxu1 %v2857_v13 }
 0x6ca   :  { %2470 = vmatpush3.msra.mxu1 %v2985_v23 }
 0x6cb   :  { %2471 = vmatprep.subr.mxu1 %v2857_v13 }
 0x6cc   :  { %2472 = vmatpush3.msra.mxu1 %v2991_v24 }
 0x6cd   :  { %2473 = vmatprep.subr.mxu1 %v2857_v13 }
 0x6ce   :  { %2474 = vmatpush3.msra.mxu1 %v2998_v25 }
 0x6cf   :  { %2489 = vmatprep.subr.mxu1 %v2857_v13 }
 0x787   :  { %v538_v11 = vpop.f32.mrf.mxu1 }
 0x788   :  { %v543_v12 = vrot.slane %v538_v11, 4 }
 0x789   :  { %v2455_v14 = vpop.f32.mrf.mxu1 }
 0x78a   :  { %v545_v15 = vadd.f32 %v543_v12, %v3036_v35 }
 0x78c   :  { %2651 = vtanh.f32 %v545_v15  ;;  %v2243_v17 = vmul.f32 -1.442695, %v545_v15 }
 0x78e   :  { %2653 = vpow2.f32 %v2243_v17 }
 0x799   :  { %v2652_v16 = vpop.eup %2651 }
 0x79a   :  { %558 = vrot.lane.b32.xlu1 %v2652_v16, %s2859_s21 }
 0x79b   :  { %v2654_v18 = vpop.eup %2653 }
 0x79c   :  { %v549_v19 = vadd.f32 1.0, %v2654_v18 }
 0x79e   :  { %2655 = vrcp.f32 %v549_v19 }
 0x7ab   :  { %v2656_v20 = vpop.eup %2655 }
 0x7ac   :  { %v556_v28 = vmul.f32 %v2656_v20, %v554_v27 }
 0x80c   :  { %v559_v21 = vpop.permute.xlu1 %558 }
 0x80d   :  { %v561_v26 = vmul.f32 %v2656_v20, %v559_v21 }
 0x80f   :  { %563 = vrot.lane.b32.xlu0 %v561_v26, %s2860_s24 }
 0x881   :  { %v564_v29 = vpop.permute.xlu0 %563 }
 0x882   :  { %v566_v30 = vadd.f32 %v564_v29, %v556_v28 }
 0x884   :  { %2657 = vtanh.f32 %v566_v30  ;;  %v661_v51 = vrot.slane %v566_v30, 6 }
 0x891   :  { %v2658_v31 = vpop.eup %2657 }
 0x892   :  { %569 = vrot.lane.b32.xlu1 %v2658_v31, %s2859_s21 }
 0x904   :  { %v570_v32 = vpop.permute.xlu1 %569 }
 0x905   :  { %v572_v34 = vmul.f32 %v2656_v20, %v570_v32 }
 0x907   :  { %v574_v37 = vrot.slane %v572_v34, 4  ;;  %v1118_v38 = vsel %vm1117_vm6, %v1116_v36, %v572_v34 }
 0x909   :  { %575 = vrot.lane.b32.xlu0 %v574_v37, %s2860_s24 }
 0x97b   :  { %v576_v39 = vpop.permute.xlu0 %575 }
 0x97c   :  { %2465 = vmatmul.mubr.msk.f32.vlgmr.msra.gmra.mxu0 %vm174_vm4, %v576_v39 }
 0x97d   :  { %2479 = vmatpush3.msra.mxu0 %v2978_v22  ;;  %2486 = vmatprep.mubr.msk.f32.mxu0 %vm2858_vm3, %v2857_v13 }
 0x97e   :  { %2480 = vmatprep.subr.mxu0 %v2857_v13 }
 0x97f   :  { %2481 = vmatpush3.msra.mxu0 %v2985_v23 }
 0x980   :  { %2482 = vmatprep.subr.mxu0 %v2857_v13 }
 0x981   :  { %2483 = vmatpush3.msra.mxu0 %v2991_v24 }
 0x982   :  { %2484 = vmatprep.subr.mxu0 %v2857_v13 }
 0x983   :  { %2485 = vmatpush3.msra.mxu0 %v2998_v25 }
 0x984   :  { %2500 = vmatprep.subr.mxu0 %v2857_v13 }
 0xa3c   :  { %v645_v40 = vpop.f32.mrf.mxu0 }
 0xa3d   :  { %v650_v41 = vrot.slane %v645_v40, 2 }
 0xa3e   :  { %v2466_v42 = vpop.f32.mrf.mxu0 }
 0xa3f   :  { %v652_v43 = vadd.f32 %v650_v41, %v3036_v35 }
 0xa41   :  { %2659 = vtanh.f32 %v652_v43  ;;  %v2245_v45 = vmul.f32 -1.442695, %v652_v43 }
 0xa43   :  { %2661 = vpow2.f32 %v2245_v45 }
 0xa4e   :  { %v2660_v44 = vpop.eup %2659 }
 0xa4f   :  { %665 = vrot.lane.b32.xlu1 %v2660_v44, %s2859_s21 }
 0xa50   :  { %v2662_v46 = vpop.eup %2661 }
 0xa51   :  { %v656_v47 = vadd.f32 1.0, %v2662_v46 }
 0xa53   :  { %2663 = vrcp.f32 %v656_v47 }
 0xa60   :  { %v2664_v48 = vpop.eup %2663 }
 0xa61   :  { %v663_v52 = vmul.f32 %v2664_v48, %v661_v51 }
 0xac1   :  { %v666_v49 = vpop.permute.xlu1 %665 }
 0xac2   :  { %v668_v50 = vmul.f32 %v2664_v48, %v666_v49 }
 0xac4   :  { %670 = vrot.lane.b32.xlu0 %v668_v50, %s2860_s24 }
 0xb36   :  { %v671_v53 = vpop.permute.xlu0 %670 }
 0xb37   :  { %v673_v54 = vadd.f32 %v671_v53, %v663_v52 }
 0xb39   :  { %2665 = vtanh.f32 %v673_v54  ;;  %v765_v6 = vrot.slane %v673_v54, 6 }
 0xb46   :  { %v2666_v35 = vpop.eup %2665 }
 0xb47   :  { %676 = vrot.lane.b32.xlu1 %v2666_v35, %s2859_s21 }
 0xbb9   :  { %v677_v55 = vpop.permute.xlu1 %676 }
 0xbba   :  { %v679_v56 = vmul.f32 %v2664_v48, %v677_v55 }
 0xbbc   :  { %v681_v57 = vrot.slane %v679_v56, 6  ;;  %v3101_v58 = vsel %vm1119_vm7, %v1118_v38, %v679_v56 }
 0xbbe   :  { %682 = vrot.lane.b32.xlu0 %v681_v57, %s2860_s24 }
 0xc30   :  { %v683_v59 = vpop.permute.xlu0 %682 }
 0xc31   :  { %2476 = vmatmul.mubr.msk.f32.vlgmr.msra.gmra.mxu1 %vm174_vm4, %v683_v59 }
 0xc32   :  { %2490 = vmatpush3.msra.mxu1 %v2978_v22  ;;  %2497 = vmatprep.mubr.msk.f32.mxu1 %vm2858_vm3, %v2857_v13 }
 0xc33   :  { %2491 = vmatprep.subr.mxu1 %v2857_v13 }
 0xc34   :  { %2492 = vmatpush3.msra.mxu1 %v2985_v23 }
 0xc35   :  { %2493 = vmatprep.subr.mxu1 %v2857_v13 }
 0xc36   :  { %2494 = vmatpush3.msra.mxu1 %v2991_v24 }
 0xc37   :  { %2495 = vmatprep.subr.mxu1 %v2857_v13 }
 0xc38   :  { %2496 = vmatpush3.msra.mxu1 %v2998_v25 }
 0xcf1   :  { %v752_v60 = vpop.f32.mrf.mxu1 }
 0xcf2   :  { %v756_v61 = vadd.f32 %v752_v60, %v3034_v33 }
 0xcf3   :  { %v2477_v62 = vpop.f32.mrf.mxu1 }
 0xcf4   :  { %2667 = vtanh.f32 %v756_v61  ;;  %v2247_v0 = vmul.f32 -1.442695, %v756_v61 }
 0xcf6   :  { %2669 = vpow2.f32 %v2247_v0 }
 0xd01   :  { %v2668_v63 = vpop.eup %2667 }
 0xd02   :  { %769 = vrot.lane.b32.xlu1 %v2668_v63, %s2859_s21 }
 0xd03   :  { %v2670_v1 = vpop.eup %2669 }
 0xd04   :  { %v760_v2 = vadd.f32 1.0, %v2670_v1 }
 0xd06   :  { %2671 = vrcp.f32 %v760_v2 }
 0xd13   :  { %v2672_v3 = vpop.eup %2671 }
 0xd14   :  { %v767_v7 = vmul.f32 %v2672_v3, %v765_v6 }
 0xd74   :  { %v770_v4 = vpop.permute.xlu1 %769 }
 0xd75   :  { %v772_v5 = vmul.f32 %v2672_v3, %v770_v4 }
 0xd77   :  { %774 = vrot.lane.b32.xlu0 %v772_v5, %s2860_s24 }
 0xde9   :  { %v775_v8 = vpop.permute.xlu0 %774 }
 0xdea   :  { %v777_v9 = vadd.f32 %v775_v8, %v767_v7 }
 0xdec   :  { %2673 = vtanh.f32 %v777_v9 }
 0xdf9   :  { %v2674_v10 = vpop.eup %2673 }
 0xdfa   :  { %780 = vrot.lane.b32.xlu1 %v2674_v10, %s2859_s21  ;;  %v2257_v10 = vld [vmem:[%s3379_s2 + $0x38] sm:$0xff] }
 0xdfb   :  { %2511 = vmatprep.subr.mxu1 %v2257_v10 }
 0xe6c   :  { %v781_v11 = vpop.permute.xlu1 %780 }
 0xe6d   :  { %v3118_v12 = vmul.f32 %v2672_v3, %v781_v11  ;;  %v2256_v11 = vld [vmem:[%s3379_s2 + $0x30] sm:$0xff] }
 0xe6f   :  { %785 = vrot.lane.b32.xlu0 %v3118_v12, %s2860_s24 }
 0xee1   :  { %v786_v14 = vpop.permute.xlu0 %785 }
 0xee2   :  { %2487 = vmatmul.mubr.msk.f32.vlgmr.msra.gmra.mxu0 %vm174_vm4, %v786_v14  ;;  %v2255_v14 = vld [vmem:[%s3379_s2 + $0x28] sm:$0xff] }
 0xee3   :  { %2501 = vmatpush3.msra.mxu0 %v2978_v22  ;;  %2508 = vmatprep.mubr.msk.f32.mxu0 %vm2858_vm3, %v2857_v13 }
 0xee4   :  { %2502 = vmatprep.subr.mxu0 %v2857_v13 }
 0xee5   :  { %2503 = vmatpush3.msra.mxu0 %v2985_v23 }
 0xee6   :  { %2504 = vmatprep.subr.mxu0 %v2857_v13 }
 0xee7   :  { %2505 = vmatpush3.msra.mxu0 %v2991_v24 }
 0xee8   :  { %2506 = vmatprep.subr.mxu0 %v2857_v13 }
 0xee9   :  { %2507 = vmatpush3.msra.mxu0 %v2998_v25  ;;  %v871_v25 = vrot.slane %v777_v9, 6 }
 0xeea   :  { %2522 = vmatprep.subr.mxu0 %v2857_v13 }
 0xfa2   :  { %v855_v15 = vpop.f32.mrf.mxu0 }
 0xfa3   :  { %v860_v16 = vrot.slane %v855_v15, 6  ;;  %v3185_v15 = vld [vmem:[%s3380_s3 + $0x28] sm:$0xff] }
 0xfa4   :  { %v2488_v22 = vpop.f32.mrf.mxu0 }
 0xfa5   :  { %v862_v17 = vadd.f32 %v860_v16, %v3034_v33  ;;  %v2254_v16 = vld [vmem:[%s3379_s2 + $0x20] sm:$0xff] }
 0xfa7   :  { %2675 = vtanh.f32 %v862_v17  ;;  %v2249_v23 = vmul.f32 -1.442695, %v862_v17  ;;  %v3199_v17 = vld [vmem:[%s3380_s3 + $0x20] sm:$0xff] }
 0xfa9   :  { %2677 = vpow2.f32 %v2249_v23 }
 0xfb4   :  { %v2676_v18 = vpop.eup %2675 }
 0xfb5   :  { %875 = vrot.lane.b32.xlu1 %v2676_v18, %s2859_s21  ;;  %v2266_v18 = vld [vmem:[%s3382_s5 + $0x2] sm:$0x3] }
 0xfb6   :  { %v2678_v19 = vpop.eup %2677 }
 0xfb7   :  { %v866_v20 = vadd.f32 1.0, %v2678_v19 }
 0xfb9   :  { %2679 = vrcp.f32 %v866_v20 }
 0xfc6   :  { %v2680_v24 = vpop.eup %2679 }
 0xfc7   :  { %v873_v27 = vmul.f32 %v2680_v24, %v871_v25 }
0x1027   :  { %v876_v21 = vpop.permute.xlu1 %875 }
0x1028   :  { %v878_v26 = vmul.f32 %v2680_v24, %v876_v21 }
0x102a   :  { %880 = vrot.lane.b32.xlu0 %v878_v26, %s2860_s24 }
0x109c   :  { %v881_v28 = vpop.permute.xlu0 %880 }
0x109d   :  { %v883_v29 = vadd.f32 %v881_v28, %v873_v27  ;;  %v2263_v27 = vld [vmem:[%s3381_s4 + $0x1] ss:$0 sm:$0xff] }
0x109f   :  { %2681 = vtanh.f32 %v883_v29  ;;  %v978_v48 = vrot.slane %v883_v29, 6 }
0x10ac   :  { %v2682_v30 = vpop.eup %2681 }
0x10ad   :  { %886 = vrot.lane.b32.xlu1 %v2682_v30, %s2859_s21 }
0x111f   :  { %v887_v31 = vpop.permute.xlu1 %886 }
0x1120   :  { %v889_v32 = vmul.f32 %v2680_v24, %v887_v31  ;;  %v2267_v24 = vld [vmem:[%s3383_s6 + $0x2] sm:$0x3] }
0x1122   :  { %v891_v34 = vrot.slane %v889_v32, 2  ;;  %v1121_v35 = vsel %vm1115_vm5, %v3118_v12, %v889_v32  ;;  %v3176_v12 = vld [vmem:[%s3380_s3 + $0x30] sm:$0xff] }
0x1124   :  { %892 = vrot.lane.b32.xlu0 %v891_v34, %s2860_s24 }
0x1196   :  { %v893_v36 = vpop.permute.xlu0 %892 }
0x1197   :  { %2498 = vmatmul.mubr.msk.f32.vlgmr.msra.gmra.mxu1 %vm174_vm4, %v893_v36 }
0x1198   :  { %2512 = vmatpush3.msra.mxu1 %v2257_v10 }
0x1199   :  { %2513 = vmatprep.subr.mxu1 %v2256_v11 }
0x119a   :  { %2514 = vmatpush3.msra.mxu1 %v2256_v11 }
0x119b   :  { %2515 = vmatprep.subr.mxu1 %v2255_v14 }
0x119c   :  { %2516 = vmatpush3.msra.mxu1 %v2255_v14 }
0x119d   :  { %2517 = vmatprep.subr.mxu1 %v2254_v16 }
0x119e   :  { %2518 = vmatpush3.msra.mxu1 %v2254_v16 }
0x119f   :  { %2533 = vmatprep.subr.mxu1 %v2857_v13 }
0x1257   :  { %v962_v37 = vpop.f32.mrf.mxu1 }
0x1258   :  { %v967_v38 = vrot.slane %v962_v37, 4 }
0x1259   :  { %v2499_v39 = vpop.f32.mrf.mxu1 }
0x125a   :  { %v969_v40 = vadd.f32 %v967_v38, %v3034_v33 }
0x125c   :  { %2683 = vtanh.f32 %v969_v40  ;;  %v2251_v42 = vmul.f32 -1.442695, %v969_v40 }
0x125e   :  { %2685 = vpow2.f32 %v2251_v42 }
0x1269   :  { %v2684_v41 = vpop.eup %2683 }
0x126a   :  { %982 = vrot.lane.b32.xlu1 %v2684_v41, %s2859_s21 }
0x126b   :  { %v2686_v43 = vpop.eup %2685 }
0x126c   :  { %v973_v44 = vadd.f32 1.0, %v2686_v43 }
0x126e   :  { %2687 = vrcp.f32 %v973_v44 }
0x127b   :  { %v2688_v45 = vpop.eup %2687 }
0x127c   :  { %v980_v49 = vmul.f32 %v2688_v45, %v978_v48 }
0x12dc   :  { %v983_v46 = vpop.permute.xlu1 %982 }
0x12dd   :  { %v985_v47 = vmul.f32 %v2688_v45, %v983_v46 }
0x12df   :  { %987 = vrot.lane.b32.xlu0 %v985_v47, %s2860_s24 }
0x1351   :  { %v988_v50 = vpop.permute.xlu0 %987 }
0x1352   :  { %v990_v51 = vadd.f32 %v988_v50, %v980_v49 }
0x1354   :  { %2689 = vtanh.f32 %v990_v51  ;;  %v1085_v6 = vrot.slane %v990_v51, 6 }
0x1361   :  { %v2690_v52 = vpop.eup %2689 }
0x1362   :  { %993 = vrot.lane.b32.xlu1 %v2690_v52, %s2859_s21 }
0x13d4   :  { %v994_v53 = vpop.permute.xlu1 %993 }
0x13d5   :  { %v996_v54 = vmul.f32 %v2688_v45, %v994_v53 }
0x13d7   :  { %v998_v55 = vrot.slane %v996_v54, 4  ;;  %v3146_v56 = vsel %vm1117_vm6, %v1121_v35, %v996_v54 }
0x13d9   :  { %999 = vrot.lane.b32.xlu0 %v998_v55, %s2860_s24 }
0x144b   :  { %v1000_v57 = vpop.permute.xlu0 %999 }
0x144c   :  { %2509 = vmatmul.mubr.msk.f32.vlgmr.msra.gmra.mxu0 %vm174_vm4, %v1000_v57 }
0x144d   :  { %2530 = vmatprep.mubr.msk.f32.mxu0 %vm2858_vm3, %v2857_v13 }
0x150c   :  { %v1069_v59 = vpop.f32.mrf.mxu0 }
0x150d   :  { %v1074_v60 = vrot.slane %v1069_v59, 2 }
0x150e   :  { %v2510_v61 = vpop.f32.mrf.mxu0 }
0x150f   :  { %v1076_v62 = vadd.f32 %v1074_v60, %v3034_v33 }
0x1511   :  { %2691 = vtanh.f32 %v1076_v62  ;;  %v2253_v0 = vmul.f32 -1.442695, %v1076_v62 }
0x1513   :  { %2693 = vpow2.f32 %v2253_v0 }
0x151e   :  { %v2692_v63 = vpop.eup %2691 }
0x151f   :  { %1089 = vrot.lane.b32.xlu1 %v2692_v63, %s2859_s21 }
0x1520   :  { %v2694_v1 = vpop.eup %2693 }
0x1521   :  { %v1080_v2 = vadd.f32 1.0, %v2694_v1 }
0x1523   :  { %2695 = vrcp.f32 %v1080_v2 }
0x1530   :  { %v2696_v3 = vpop.eup %2695 }
0x1531   :  { %v1087_v7 = vmul.f32 %v2696_v3, %v1085_v6 }
0x1591   :  { %v1090_v4 = vpop.permute.xlu1 %1089 }
0x1592   :  { %v1092_v5 = vmul.f32 %v2696_v3, %v1090_v4 }
0x1594   :  { %1094 = vrot.lane.b32.xlu0 %v1092_v5, %s2860_s24 }
0x1598   :  { %1144 = vrot.lane.b32.xlu0 %v3101_v58, %s2860_s24  ;;  %v3170_v58 = vld [vmem:[%s3380_s3 + $0x38] sm:$0xff] }
0x1599   :  { %2523 = vmatpush3.msra.mxu0 %v3170_v58 }
0x159a   :  { %2524 = vmatprep.subr.mxu0 %v2857_v13 }
0x159b   :  { %2525 = vmatpush3.msra.mxu0 %v3176_v12 }
0x159c   :  { %2526 = vmatprep.subr.mxu0 %v2857_v13 }
0x159d   :  { %2527 = vmatpush3.msra.mxu0 %v3185_v15 }
0x159e   :  { %2528 = vmatprep.subr.mxu0 %v2857_v13 }
0x159f   :  { %2529 = vmatpush3.msra.mxu0 %v3199_v17 }
0x15a0   :  { %2531 = vmatmul.mubr.msk.f32.vlgmr.msra.gmra.mxu0 %vm174_vm4, %v2266_v18  ;;  %2544 = vmatprep.subr.mxu0 %v2857_v13 }
0x15a1   :  { %2545 = vmatpush3.msra.mxu0 %v3170_v58  ;;  %2552 = vmatprep.mubr.msk.f32.mxu0 %vm2858_vm3, %v2857_v13 }
0x15a2   :  { %2546 = vmatprep.subr.mxu0 %v2857_v13 }
0x15a3   :  { %2547 = vmatpush3.msra.mxu0 %v3176_v12 }
0x15a4   :  { %2548 = vmatprep.subr.mxu0 %v2857_v13 }
0x15a5   :  { %2549 = vmatpush3.msra.mxu0 %v3185_v15 }
0x15a6   :  { %2550 = vmatprep.subr.mxu0 %v2857_v13 }
0x15a7   :  { %2551 = vmatpush3.msra.mxu0 %v3199_v17 }
0x15a8   :  { %2566 = vmatprep.subr.mxu0 %v2857_v13 }
0x1606   :  { %v1095_v33 = vpop.permute.xlu0 %1094 }
0x1607   :  { %v3157_v8 = vadd.f32 %v1095_v33, %v1087_v7 }
0x1609   :  { %2697 = vtanh.f32 %v3157_v8 }
0x160a   :  { %v1145_v9 = vpop.permute.xlu0 %1144 }
0x160b   :  { %2519 = vmatprep.mubr.msk.f32.mxu1 %vm174_vm4, %v1145_v9 }
0x1616   :  { %v2698_v22 = vpop.eup %2697 }
0x1617   :  { %1100 = vrot.lane.b32.xlu1 %v2698_v22, %s2859_s21 }
0x1660   :  { %v1300_v26 = vpop.f32.mrf.mxu0 }
0x1662   :  { %v2532_v25 = vpop.f32.mrf.mxu0 }
0x1689   :  { %v1101_v23 = vpop.permute.xlu1 %1100 }
0x168a   :  { %v3216_v19 = vmul.f32 %v2696_v3, %v1101_v23 }
0x168c   :  { %v1123_v20 = vsel %vm1119_vm7, %v3146_v56, %v3216_v19 }
0x168d   :  { %1146 = vrot.lane.b32.xlu1 %v1123_v20, %s2860_s24 }
0x1691   :  { %1313 = vrot.lane.b32.xlu1 %v2267_v24, %s2860_s24 }
0x16ff   :  { %v1147_v21 = vpop.permute.xlu1 %1146 }
0x1700   :  { %2520 = vmatmul.mubr.msk.f32.vlgmr.msra.gmra.mxu1 %vm174_vm4, %v1147_v21 }
0x1701   :  { %2534 = vmatpush3.msra.mxu1 %v3170_v58  ;;  %2541 = vmatprep.mubr.msk.f32.mxu1 %vm2858_vm3, %v2857_v13 }
0x1702   :  { %2535 = vmatprep.subr.mxu1 %v2857_v13 }
0x1703   :  { %2536 = vmatpush3.msra.mxu1 %v3176_v12  ;;  %v1314_v42 = vpop.permute.xlu1 %1313 }
0x1704   :  { %2537 = vmatprep.subr.mxu1 %v2857_v13 }
0x1705   :  { %2538 = vmatpush3.msra.mxu1 %v3185_v15 }
0x1706   :  { %2539 = vmatprep.subr.mxu1 %v2857_v13 }
0x1707   :  { %2540 = vmatpush3.msra.mxu1 %v3199_v17 }
0x1708   :  { %2555 = vmatprep.subr.mxu1 %v2857_v13 }
0x17c0   :  { %v2521_v28 = vpop.f32.mrf.mxu1 }
0x17c1   :  { %v3241_v29 = vadd.f32 %v2521_v28, %v2263_v27 }
0x17c2   :  { %v1218_v30 = vpop.f32.mrf.mxu1 }
0x17c3   :  { %v3243_v31 = vadd.f32 %v2263_v27, %v1218_v30 }
0x17c5   :  { %v1304_v32 = vadd.f32 %v1300_v26, %v3243_v31 }
0x17c7   :  { %2699 = vtanh.f32 %v1304_v32  ;;  %v2269_v36 = vmul.f32 -1.442695, %v1304_v32 }
0x17c9   :  { %2701 = vpow2.f32 %v2269_v36 }
0x17d4   :  { %v2700_v34 = vpop.eup %2699 }
0x17d5   :  { %1318 = vrot.lane.b32.xlu0 %v2700_v34, %s2859_s21 }
0x17d6   :  { %v2702_v37 = vpop.eup %2701 }
0x17d7   :  { %v1308_v38 = vadd.f32 1.0, %v2702_v37 }
0x17d9   :  { %2703 = vrcp.f32 %v1308_v38 }
0x17e6   :  { %v2704_v39 = vpop.eup %2703 }
0x17e7   :  { %v1316_v43 = vmul.f32 %v2704_v39, %v1314_v42 }
0x1847   :  { %v1319_v40 = vpop.permute.xlu0 %1318 }
0x1848   :  { %v1321_v41 = vmul.f32 %v2704_v39, %v1319_v40 }
0x184a   :  { %1323 = vrot.lane.b32.xlu0 %v1321_v41, %s2860_s24 }
0x18bc   :  { %v1324_v44 = vpop.permute.xlu0 %1323 }
0x18bd   :  { %v1326_v45 = vadd.f32 %v1324_v44, %v1316_v43 }
0x18bf   :  { %2705 = vtanh.f32 %v1326_v45  ;;  %v1420_v61 = vrot.slane %v1326_v45, 6 }
0x18cc   :  { %v2706_v46 = vpop.eup %2705 }
0x18cd   :  { %1329 = vrot.lane.b32.xlu1 %v2706_v46, %s2859_s21 }
0x193f   :  { %v1330_v47 = vpop.permute.xlu1 %1329 }
0x1940   :  { %v1332_v48 = vmul.f32 %v2704_v39, %v1330_v47 }
0x1942   :  { %1334 = vrot.lane.b32.xlu0 %v1332_v48, %s2860_s24 }
0x19b4   :  { %v3250_v49 = vpop.permute.xlu0 %1334 }
0x19b5   :  { %2542 = vmatmul.mubr.msk.f32.vlgmr.msra.gmra.mxu1 %vm174_vm4, %v3250_v49 }
0x19b6   :  { %2556 = vmatpush3.msra.mxu1 %v3170_v58  ;;  %2563 = vmatprep.mubr.msk.f32.mxu1 %vm2858_vm3, %v2857_v13 }
0x19b7   :  { %2557 = vmatprep.subr.mxu1 %v2857_v13 }
0x19b8   :  { %2558 = vmatpush3.msra.mxu1 %v3176_v12 }
0x19b9   :  { %2559 = vmatprep.subr.mxu1 %v2857_v13 }
0x19ba   :  { %2560 = vmatpush3.msra.mxu1 %v3185_v15 }
0x19bb   :  { %2561 = vmatprep.subr.mxu1 %v2857_v13 }
0x19bc   :  { %2562 = vmatpush3.msra.mxu1 %v3199_v17 }
0x19bd   :  { %2577 = vmatprep.subr.mxu1 %v2857_v13 }
0x1a75   :  { %v1404_v50 = vpop.f32.mrf.mxu1 }
0x1a76   :  { %v1409_v51 = vrot.slane %v1404_v50, 6 }
0x1a77   :  { %v2543_v52 = vpop.f32.mrf.mxu1 }
0x1a78   :  { %v1411_v53 = vadd.f32 %v1409_v51, %v3243_v31 }
0x1a7a   :  { %2707 = vtanh.f32 %v1411_v53  ;;  %v2271_v35 = vmul.f32 -1.442695, %v1411_v53 }
0x1a7c   :  { %2709 = vpow2.f32 %v2271_v35 }
0x1a87   :  { %v2708_v54 = vpop.eup %2707 }
0x1a88   :  { %1424 = vrot.lane.b32.xlu1 %v2708_v54, %s2859_s21 }
0x1a89   :  { %v2710_v55 = vpop.eup %2709 }
0x1a8a   :  { %v1415_v56 = vadd.f32 1.0, %v2710_v55 }
0x1a8c   :  { %2711 = vrcp.f32 %v1415_v56 }
0x1a99   :  { %v2712_v57 = vpop.eup %2711 }
0x1a9a   :  { %v1422_v62 = vmul.f32 %v2712_v57, %v1420_v61 }
0x1afa   :  { %v1425_v59 = vpop.permute.xlu1 %1424 }
0x1afb   :  { %v1427_v60 = vmul.f32 %v2712_v57, %v1425_v59 }
0x1afd   :  { %1429 = vrot.lane.b32.xlu0 %v1427_v60, %s2860_s24 }
0x1b6f   :  { %v1430_v63 = vpop.permute.xlu0 %1429 }
0x1b70   :  { %v1432_v0 = vadd.f32 %v1430_v63, %v1422_v62 }
0x1b72   :  { %2713 = vtanh.f32 %v1432_v0  ;;  %v1527_v20 = vrot.slane %v1432_v0, 6 }
0x1b7f   :  { %v2714_v1 = vpop.eup %2713 }
0x1b80   :  { %1435 = vrot.lane.b32.xlu1 %v2714_v1, %s2859_s21 }
0x1bf2   :  { %v1436_v2 = vpop.permute.xlu1 %1435 }
0x1bf3   :  { %v1438_v3 = vmul.f32 %v2712_v57, %v1436_v2 }
0x1bf5   :  { %v1440_v4 = vrot.slane %v1438_v3, 2 }
0x1bf7   :  { %1441 = vrot.lane.b32.xlu0 %v1440_v4, %s2860_s24 }
0x1c69   :  { %v1442_v5 = vpop.permute.xlu0 %1441 }
0x1c6a   :  { %2553 = vmatmul.mubr.msk.f32.vlgmr.msra.gmra.mxu0 %vm174_vm4, %v1442_v5 }
0x1c6b   :  { %2567 = vmatpush3.msra.mxu0 %v3170_v58  ;;  %2574 = vmatprep.mubr.msk.f32.mxu0 %vm2858_vm3, %v2857_v13 }
0x1c6c   :  { %2568 = vmatprep.subr.mxu0 %v2857_v13 }
0x1c6d   :  { %2569 = vmatpush3.msra.mxu0 %v3176_v12 }
0x1c6e   :  { %2570 = vmatprep.subr.mxu0 %v2857_v13 }
0x1c6f   :  { %2571 = vmatpush3.msra.mxu0 %v3185_v15 }
0x1c70   :  { %2572 = vmatprep.subr.mxu0 %v2857_v13 }
0x1c71   :  { %2573 = vmatpush3.msra.mxu0 %v3199_v17 }
0x1c72   :  { %2588 = vmatprep.subr.mxu0 %v2857_v13 }
0x1d2a   :  { %v1511_v6 = vpop.f32.mrf.mxu0 }
0x1d2b   :  { %v1516_v7 = vrot.slane %v1511_v6, 4 }
0x1d2c   :  { %v2554_v33 = vpop.f32.mrf.mxu0 }
0x1d2d   :  { %v1518_v9 = vadd.f32 %v1516_v7, %v3243_v31 }
0x1d2f   :  { %2715 = vtanh.f32 %v1518_v9  ;;  %v2273_v11 = vmul.f32 -1.442695, %v1518_v9 }
0x1d31   :  { %2717 = vpow2.f32 %v2273_v11 }
0x1d3c   :  { %v2716_v10 = vpop.eup %2715 }
0x1d3d   :  { %1531 = vrot.lane.b32.xlu1 %v2716_v10, %s2859_s21 }
0x1d3e   :  { %v2718_v14 = vpop.eup %2717 }
0x1d3f   :  { %v1522_v16 = vadd.f32 1.0, %v2718_v14 }
0x1d41   :  { %2719 = vrcp.f32 %v1522_v16 }
0x1d4e   :  { %v2720_v22 = vpop.eup %2719 }
0x1d4f   :  { %v1529_v24 = vmul.f32 %v2720_v22, %v1527_v20 }
0x1daf   :  { %v1532_v18 = vpop.permute.xlu1 %1531 }
0x1db0   :  { %v1534_v23 = vmul.f32 %v2720_v22, %v1532_v18 }
0x1db2   :  { %1536 = vrot.lane.b32.xlu0 %v1534_v23, %s2860_s24 }
0x1e24   :  { %v1537_v21 = vpop.permute.xlu0 %1536 }
0x1e25   :  { %v1539_v26 = vadd.f32 %v1537_v21, %v1529_v24 }
0x1e27   :  { %2721 = vtanh.f32 %v1539_v26  ;;  %v1634_v46 = vrot.slane %v1539_v26, 6 }
0x1e34   :  { %v2722_v25 = vpop.eup %2721 }
0x1e35   :  { %1542 = vrot.lane.b32.xlu1 %v2722_v25, %s2859_s21 }
0x1ea7   :  { %v1543_v27 = vpop.permute.xlu1 %1542 }
0x1ea8   :  { %v1545_v28 = vmul.f32 %v2720_v22, %v1543_v27 }
0x1eaa   :  { %v1547_v30 = vrot.slane %v1545_v28, 4 }
0x1eac   :  { %1548 = vrot.lane.b32.xlu0 %v1547_v30, %s2860_s24  ;;  %v2092_v30 = vld [vmem:[#allocation2 + $0x18] sm:$0xff] }
0x1f1e   :  { %v1549_v32 = vpop.permute.xlu0 %1548 }
0x1f1f   :  { %2564 = vmatmul.mubr.msk.f32.vlgmr.msra.gmra.mxu1 %vm174_vm4, %v1549_v32 }
0x1f20   :  { %2578 = vmatpush3.msra.mxu1 %v3170_v58  ;;  %2585 = vmatprep.mubr.msk.f32.mxu1 %vm2858_vm3, %v2857_v13 }
0x1f21   :  { %2579 = vmatprep.subr.mxu1 %v2857_v13 }
0x1f22   :  { %2580 = vmatpush3.msra.mxu1 %v3176_v12 }
0x1f23   :  { %2581 = vmatprep.subr.mxu1 %v2857_v13 }
0x1f24   :  { %2582 = vmatpush3.msra.mxu1 %v3185_v15 }
0x1f25   :  { %2583 = vmatprep.subr.mxu1 %v2857_v13 }
0x1f26   :  { %2584 = vmatpush3.msra.mxu1 %v3199_v17 }
0x1f27   :  { %2599 = vmatprep.subr.mxu1 %v2857_v13 }
0x1fdf   :  { %v1618_v34 = vpop.f32.mrf.mxu1 }
0x1fe0   :  { %v1623_v36 = vrot.slane %v1618_v34, 2  ;;  %v2091_v34 = vld [vmem:[#allocation2 + $0x10] sm:$0xff] }
0x1fe1   :  { %v2565_v37 = vpop.f32.mrf.mxu1 }
0x1fe2   :  { %v1625_v38 = vadd.f32 %v1623_v36, %v3243_v31  ;;  %v2090_v36 = vld [vmem:[#allocation2 + $0x8] sm:$0xff]  ;;  %v2089_v37 = vld [vmem:[#allocation2] sm:$0xff] }
0x1fe4   :  { %2723 = vtanh.f32 %v1625_v38  ;;  %v2275_v40 = vmul.f32 -1.442695, %v1625_v38 }
0x1fe6   :  { %2725 = vpow2.f32 %v2275_v40 }
0x1ff1   :  { %v2724_v39 = vpop.eup %2723 }
0x1ff2   :  { %1638 = vrot.lane.b32.xlu1 %v2724_v39, %s2859_s21 }
0x1ff3   :  { %v2726_v41 = vpop.eup %2725 }
0x1ff4   :  { %v1629_v42 = vadd.f32 1.0, %v2726_v41 }
0x1ff6   :  { %2727 = vrcp.f32 %v1629_v42 }
0x2003   :  { %v2728_v43 = vpop.eup %2727 }
0x2004   :  { %v1636_v47 = vmul.f32 %v2728_v43, %v1634_v46 }
0x2064   :  { %v1639_v44 = vpop.permute.xlu1 %1638 }
0x2065   :  { %v1641_v45 = vmul.f32 %v2728_v43, %v1639_v44 }
0x2067   :  { %1643 = vrot.lane.b32.xlu0 %v1641_v45, %s2860_s24 }
0x20d9   :  { %v1644_v48 = vpop.permute.xlu0 %1643 }
0x20da   :  { %v1646_v50 = vadd.f32 %v1644_v48, %v1636_v47 }
0x20dc   :  { %2729 = vtanh.f32 %v1646_v50  ;;  %v1738_v1 = vrot.slane %v1646_v50, 6 }
0x20e9   :  { %v2730_v31 = vpop.eup %2729 }
0x20ea   :  { %1649 = vrot.lane.b32.xlu1 %v2730_v31, %s2859_s21 }
0x215c   :  { %v1650_v51 = vpop.permute.xlu1 %1649 }
0x215d   :  { %v1652_v52 = vmul.f32 %v2728_v43, %v1650_v51 }
0x215f   :  { %v1654_v53 = vrot.slane %v1652_v52, 6 }
0x2161   :  { %1655 = vrot.lane.b32.xlu0 %v1654_v53, %s2860_s24 }
0x21d3   :  { %v1656_v54 = vpop.permute.xlu0 %1655 }
0x21d4   :  { %2575 = vmatmul.mubr.msk.f32.vlgmr.msra.gmra.mxu0 %vm174_vm4, %v1656_v54 }
0x21d5   :  { %2589 = vmatpush3.msra.mxu0 %v3170_v58  ;;  %2596 = vmatprep.mubr.msk.f32.mxu0 %vm2858_vm3, %v2857_v13 }
0x21d6   :  { %2590 = vmatprep.subr.mxu0 %v2857_v13 }
0x21d7   :  { %2591 = vmatpush3.msra.mxu0 %v3176_v12 }
0x21d8   :  { %2592 = vmatprep.subr.mxu0 %v2857_v13 }
0x21d9   :  { %2593 = vmatpush3.msra.mxu0 %v3185_v15 }
0x21da   :  { %2594 = vmatprep.subr.mxu0 %v2857_v13 }
0x21db   :  { %2595 = vmatpush3.msra.mxu0 %v3199_v17 }
0x21dc   :  { %2610 = vmatprep.subr.mxu0 %v2857_v13 }
0x2294   :  { %v1725_v35 = vpop.f32.mrf.mxu0 }
0x2295   :  { %v1729_v55 = vadd.f32 %v1725_v35, %v3241_v29 }
0x2296   :  { %v2576_v56 = vpop.f32.mrf.mxu0 }
0x2297   :  { %2731 = vtanh.f32 %v1729_v55  ;;  %v2277_v59 = vmul.f32 -1.442695, %v1729_v55 }
0x2299   :  { %2733 = vpow2.f32 %v2277_v59 }
0x22a4   :  { %v2732_v57 = vpop.eup %2731 }
0x22a5   :  { %1742 = vrot.lane.b32.xlu1 %v2732_v57, %s2859_s21 }
0x22a6   :  { %v2734_v60 = vpop.eup %2733 }
0x22a7   :  { %v1733_v61 = vadd.f32 1.0, %v2734_v60 }
0x22a9   :  { %2735 = vrcp.f32 %v1733_v61 }
0x22b6   :  { %v2736_v62 = vpop.eup %2735 }
0x22b7   :  { %v1740_v2 = vmul.f32 %v2736_v62, %v1738_v1 }
0x2317   :  { %v1743_v63 = vpop.permute.xlu1 %1742 }
0x2318   :  { %v1745_v0 = vmul.f32 %v2736_v62, %v1743_v63  ;;  %v2284_v63 = vld [vmem:[%s3385_s8] ss:$0 sm:$0xff]  ;;  %s2862_s8 = smov [#allocation5]  }
0x231a   :  { %1747 = vrot.lane.b32.xlu0 %v1745_v0, %s2860_s24 }
0x238c   :  { %v1748_v3 = vpop.permute.xlu0 %1747 }
0x238d   :  { %v1750_v4 = vadd.f32 %v1748_v3, %v1740_v2 }
0x238f   :  { %2737 = vtanh.f32 %v1750_v4 }
0x239c   :  { %v2738_v5 = vpop.eup %2737 }
0x239d   :  { %1753 = vrot.lane.b32.xlu1 %v2738_v5, %s2859_s21 }
0x240f   :  { %v1754_v6 = vpop.permute.xlu1 %1753 }
0x2410   :  { %v1756_v7 = vmul.f32 %v2736_v62, %v1754_v6 }
0x2412   :  { %1758 = vrot.lane.b32.xlu0 %v1756_v7, %s2860_s24 }
0x2484   :  { %v1759_v33 = vpop.permute.xlu0 %1758 }
0x2485   :  { %2586 = vmatmul.mubr.msk.f32.vlgmr.msra.gmra.mxu1 %vm174_vm4, %v1759_v33 }
0x2486   :  { %2600 = vmatpush3.msra.mxu1 %v3170_v58  ;;  %2607 = vmatprep.mubr.msk.f32.mxu1 %vm2858_vm3, %v2857_v13 }
0x2487   :  { %2601 = vmatprep.subr.mxu1 %v2857_v13 }
0x2488   :  { %2602 = vmatpush3.msra.mxu1 %v3176_v12 }
0x2489   :  { %2603 = vmatprep.subr.mxu1 %v2857_v13 }
0x248a   :  { %2604 = vmatpush3.msra.mxu1 %v3185_v15 }
0x248b   :  { %2605 = vmatprep.subr.mxu1 %v2857_v13 }
0x248c   :  { %2606 = vmatpush3.msra.mxu1 %v3199_v17  ;;  %v1844_v17 = vrot.slane %v1750_v4, 6 }
0x2545   :  { %v1828_v9 = vpop.f32.mrf.mxu1 }
0x2546   :  { %v1833_v10 = vrot.slane %v1828_v9, 6 }
0x2547   :  { %v2587_v11 = vpop.f32.mrf.mxu1 }
0x2548   :  { %v1835_v58 = vadd.f32 %v1833_v10, %v3241_v29 }
0x254a   :  { %2739 = vtanh.f32 %v1835_v58  ;;  %v2279_v16 = vmul.f32 -1.442695, %v1835_v58 }
0x254c   :  { %2741 = vpow2.f32 %v2279_v16 }
0x2557   :  { %v2740_v14 = vpop.eup %2739 }
0x2558   :  { %1848 = vrot.lane.b32.xlu1 %v2740_v14, %s2859_s21 }
0x2559   :  { %v2742_v12 = vpop.eup %2741 }
0x255a   :  { %v1839_v22 = vadd.f32 1.0, %v2742_v12 }
0x255c   :  { %2743 = vrcp.f32 %v1839_v22 }
0x2569   :  { %v2744_v18 = vpop.eup %2743 }
0x256a   :  { %v1846_v20 = vmul.f32 %v2744_v18, %v1844_v17 }
0x25ca   :  { %v1849_v15 = vpop.permute.xlu1 %1848 }
0x25cb   :  { %v1851_v23 = vmul.f32 %v2744_v18, %v1849_v15 }
0x25cd   :  { %1853 = vrot.lane.b32.xlu0 %v1851_v23, %s2860_s24 }
0x263f   :  { %v1854_v24 = vpop.permute.xlu0 %1853 }
0x2640   :  { %v1856_v21 = vadd.f32 %v1854_v24, %v1846_v20 }
0x2642   :  { %2745 = vtanh.f32 %v1856_v21 }
0x264f   :  { %v2746_v26 = vpop.eup %2745 }
0x2650   :  { %1859 = vrot.lane.b32.xlu1 %v2746_v26, %s2859_s21 }
0x26c2   :  { %v1860_v25 = vpop.permute.xlu1 %1859 }
0x26c3   :  { %v1862_v27 = vmul.f32 %v2744_v18, %v1860_v25 }
0x26c5   :  { %v1864_v28 = vrot.slane %v1862_v27, 2 }
0x26c7   :  { %1865 = vrot.lane.b32.xlu0 %v1864_v28, %s2860_s24 }
0x2739   :  { %v1866_v32 = vpop.permute.xlu0 %1865 }
0x273a   :  { %2597 = vmatmul.mubr.msk.f32.vlgmr.msra.gmra.mxu0 %vm174_vm4, %v1866_v32 }
0x273b   :  { %2611 = vmatpush3.msra.mxu0 %v2092_v30  ;;  %2618 = vmatprep.mubr.msk.f32.mxu0 %vm2858_vm3, %v2857_v13 }
0x273c   :  { %2612 = vmatprep.subr.mxu0 %v2857_v13 }
0x273d   :  { %2613 = vmatpush3.msra.mxu0 %v2091_v34 }
0x273e   :  { %2614 = vmatprep.subr.mxu0 %v2857_v13 }
0x273f   :  { %2615 = vmatpush3.msra.mxu0 %v2090_v36 }
0x2740   :  { %2616 = vmatprep.subr.mxu0 %v2857_v13 }
0x2741   :  { %2617 = vmatpush3.msra.mxu0 %v2089_v37 }
0x2742   :  { %2619 = vmatmul.mubr.msk.f32.vlgmr.msra.gmra.mxu0 %vm174_vm4, %v3250_v49  ;;  %v1951_v49 = vrot.slane %v1856_v21, 6 }
0x27fa   :  { %v1935_v38 = vpop.f32.mrf.mxu0 }
0x27fb   :  { %v1940_v39 = vrot.slane %v1935_v38, 4 }
0x27fc   :  { %v2598_v40 = vpop.f32.mrf.mxu0 }
0x27fd   :  { %v1942_v41 = vadd.f32 %v1940_v39, %v3241_v29 }
0x27ff   :  { %2747 = vtanh.f32 %v1942_v41  ;;  %v2281_v45 = vmul.f32 -1.442695, %v1942_v41 }
0x2801   :  { %2749 = vpow2.f32 %v2281_v45 }
0x2802   :  { %v2166_v42 = vpop.f32.mrf.mxu0 }
0x2803   :  { %v2167_v0 = vadd.f32 %v2284_v63, %v2166_v42 }
0x2804   :  { %v2620_v43 = vpop.f32.mrf.mxu0 }
0x2805   :  { %v2171_v1 = vsel %vm2170_vm8, %v2167_v0, -inf }
0x280c   :  { %v2748_v44 = vpop.eup %2747 }
0x280d   :  { %1955 = vrot.lane.b32.xlu1 %v2748_v44, %s2859_s21 }
0x280e   :  { %v2750_v46 = vpop.eup %2749 }
0x280f   :  { %v1946_v47 = vadd.f32 1.0, %v2750_v46 }
0x2811   :  { %2751 = vrcp.f32 %v1946_v47 }
0x281e   :  { %v2752_v13 = vpop.eup %2751 }
0x281f   :  { %v1953_v31 = vmul.f32 %v2752_v13, %v1951_v49 }
0x287f   :  { %v1956_v48 = vpop.permute.xlu1 %1955 }
0x2880   :  { %v1958_v50 = vmul.f32 %v2752_v13, %v1956_v48 }
0x2882   :  { %1960 = vrot.lane.b32.xlu0 %v1958_v50, %s2860_s24 }
0x28f4   :  { %v1961_v51 = vpop.permute.xlu0 %1960 }
0x28f5   :  { %v1963_v52 = vadd.f32 %v1961_v51, %v1953_v31 }
0x28f7   :  { %2753 = vtanh.f32 %v1963_v52 }
0x2904   :  { %v2754_v53 = vpop.eup %2753 }
0x2905   :  { %1966 = vrot.lane.b32.xlu1 %v2754_v53, %s2859_s21 }
0x2977   :  { %v1967_v54 = vpop.permute.xlu1 %1966 }
0x2978   :  { %v1969_v35 = vmul.f32 %v2752_v13, %v1967_v54 }
0x297a   :  { %v1971_v55 = vrot.slane %v1969_v35, 4 }
0x297c   :  { %1972 = vrot.lane.b32.xlu0 %v1971_v55, %s2860_s24 }
0x29ee   :  { %v1973_v56 = vpop.permute.xlu0 %1972 }
0x29ef   :  { %2608 = vmatmul.mubr.msk.f32.vlgmr.msra.gmra.mxu1 %vm174_vm4, %v1973_v56 }
0x2aaf   :  { %v2042_v57 = vpop.f32.mrf.mxu1 }
0x2ab0   :  { %v2047_v59 = vrot.slane %v2042_v57, 2 }
0x2ab1   :  { %v2609_v60 = vpop.f32.mrf.mxu1 }
0x2ab2   :  { %v2049_v61 = vadd.f32 %v2047_v59, %v3241_v29 }
0x2ab4   :  { %2755 = vtanh.f32 %v2049_v61  ;;  %v2283_v29 = vmul.f32 -1.442695, %v2049_v61 }
0x2ab6   :  { %2757 = vpow2.f32 %v2283_v29 }
0x2ac1   :  { %v2756_v62 = vpop.eup %2755 }
0x2ac2   :  { %2062 = vrot.lane.b32.xlu1 %v2756_v62, %s2859_s21 }
0x2ac3   :  { %v2758_v2 = vpop.eup %2757 }
0x2ac4   :  { %v2053_v3 = vadd.f32 1.0, %v2758_v2 }
0x2ac6   :  { %2759 = vrcp.f32 %v2053_v3 }
0x2ad3   :  { %v2760_v4 = vpop.eup %2759 }
0x2ae6   :  { %2172 = vmax.xlane.f32.xlu1 %v2171_v1 }
0x2af7   :  { %1105 = vrot.lane.b32.xlu1 %v3216_v19, %s2860_s24  ;;  %v2058_v19 = vrot.slane %v1963_v52, 6 }
0x2afb   :  { %1111 = vrot.lane.b32.xlu1 %v3157_v8, %s2861_s23  ;;  %v2060_v8 = vmul.f32 %v2760_v4, %v2058_v19 }
0x2b34   :  { %v2063_v5 = vpop.permute.xlu1 %2062 }
0x2b35   :  { %v2065_v6 = vmul.f32 %v2760_v4, %v2063_v5 }
0x2b37   :  { %2067 = vrot.lane.b32.xlu0 %v2065_v6, %s2860_s24 }
0x2b6f   :  { %v2173_v7 = vpop.xlane.xlu1 %2172 }
0x2b70   :  { %v2174_v14 = vsub.f32 %v2167_v0, %v2173_v7 }
0x2b72   :  { %v2175_v16 = vmul.f32 1.442695, %v2174_v14 }
0x2b73   :  { %v1106_v33 = vpop.permute.xlu1 %1105 }
0x2b74   :  { %1109 = vst.msk [vmem:[#allocation6 - $0x6] sm:$0xc0] %vm1108_vm9, %v1106_v33 }
0x2b77   :  { %v1112_v9 = vpop.permute.xlu1 %1111 }
0x2b78   :  { %1114 = vst.msk [vmem:[#allocation8 - $0x6] sm:$0xc0] %vm1108_vm9, %v1112_v9 }
0x2ba9   :  { %v2068_v10 = vpop.permute.xlu0 %2067 }
0x2baa   :  { %v2070_v11 = vadd.f32 %v2068_v10, %v2060_v8 }
0x2bac   :  { %2761 = vtanh.f32 %v2070_v11  ;;  %2084 = vrot.lane.b32.xlu1 %v2070_v11, %s2861_s23 }
0x2bad   :  { %2763 = vpow2.f32 %v2175_v16 }
0x2bb9   :  { %v2762_v58 = vpop.eup %2761 }
0x2bba   :  { %2073 = vrot.lane.b32.xlu0 %v2762_v58, %s2859_s21  ;;  %v2764_v12 = vpop.eup %2763  ;;  %s2191_s21 = sshll.u32 %s2862_s8, 4  ;;  %s2192_s21 = int_to_ptr.vmem [resolvable:$true] %s2191_s21 }
0x2bbb   :  { %v2177_v22 = vsel %vm2170_vm8, %v2764_v12, 0.0  ;;  %s2787_s25 = scalar_lea.vmem %s2192_s21, 32  ;;  %p2792_p6 = scmp.lt.s32.totalorder %s2192_s21, %s2192_s21 }
0x2bbc   :  { %p2788_p5 = scmp.ne.s32.totalorder %s2192_s21, %s2787_s25  ;;  %p2793_p7 = scmp.lt.s32.totalorder %s2787_s25, %s2787_s25 }
0x2bbe   :  { %p2794_p8 = por %p2793_p7, %p2792_p6 }
0x2bc0   :  { %p2795_p9 = pnand %p2794_p8, %p2788_p5 }
0x2bd9   :  { %2178 = vadd.xlane.f32.xlu0 %v2177_v22 }
0x2c1e   :  { %v2085_v18 = vpop.permute.xlu1 %2084 }
0x2c1f   :  { %2088 = vst.msk [vmem:[#allocation8 - $0x4] sm:$0xc0] %vm1108_vm9, %v2085_v18 }
0x2c2c   :  { %v2074_v15 = vpop.permute.xlu0 %2073 }
0x2c2d   :  { %v2076_v23 = vmul.f32 %v2760_v4, %v2074_v15 }
0x2c2f   :  { %2078 = vrot.lane.b32.xlu0 %v2076_v23, %s2860_s24 }
0x2c62   :  { %v2179_v17 = vpop.xlane.xlu0 %2178 }
0x2c63   :  { %2765 = vlog2.f32 %v2179_v17 }
0x2c70   :  { %v2766_v20 = vpop.eup %2765 }
0x2c71   :  { %v2181_v24 = vmul.f32 0.6931472, %v2766_v20 }
0x2c73   :  { %v2182_v21 = vadd.f32 %v2181_v24, %v2173_v7 }
0x2c75   :  { %v2183_v26 = vsub.f32 %v2167_v0, %v2182_v21 }
0x2c77   :  { %2184 = vst.msk [vmem:[#allocation5] sm:$0x3] %vm2170_vm8, %v2183_v26 }
0x2c78   :  { %2798 = shalt.err (!%p2795_p9)
}
0x2c79   :  { %2194 = dma.vmem_to_hbm [thread:$0]  %s2192_s21, 32, %s3386_s9, [#allocation4]  }
0x2c7a   :  { %s2863_s27 = smov [#allocation6]   ;;  %s2864_s29 = smov [#allocation8]  }
0x2c7b   :  { %s2200_s28 = sshll.u32 %s2863_s27, 4  ;;  %s2212_s30 = sshll.u32 %s2864_s29, 4  ;;  %s2201_s28 = int_to_ptr.vmem [resolvable:$true] %s2200_s28  ;;  %s2213_s30 = int_to_ptr.vmem [resolvable:$true] %s2212_s30 }
0x2c7c   :  { %s2807_s7 = scalar_lea.vmem %s2201_s28, 64  ;;  %p2812_p11 = scmp.lt.s32.totalorder %s2201_s28, %s2201_s28 }
0x2c7d   :  { %p2808_p10 = scmp.ne.s32.totalorder %s2201_s28, %s2807_s7  ;;  %p2813_p12 = scmp.lt.s32.totalorder %s2807_s7, %s2807_s7 }
0x2c7f   :  { %p2814_p13 = por %p2813_p12, %p2812_p11 }
0x2c81   :  { %p2815_p0 = pnand %p2814_p13, %p2808_p10 }
0x2ca1   :  { %v2079_v25 = vpop.permute.xlu0 %2078 }
0x2ca2   :  { %2082 = vst.msk [vmem:[#allocation6 - $0x4] sm:$0xc0] %vm1108_vm9, %v2079_v25 }
0x2ca3   :  { %2818 = shalt.err (!%p2815_p0)
}
0x2ca4   :  { %s2865_s12 = smov 2   ;;  %s2827_s14 = scalar_lea.vmem %s2213_s30, 64 }
0x2ca5   :  { %2206 = dma.vmem_to_hbm [thread:$0]  %s2201_s28, 64, %s3387_s10, [#allocation7], %s2860_s24, %s2860_s24, %s2865_s12  }
0x2ca6   :  { %p2828_p1 = scmp.ne.s32.totalorder %s2213_s30, %s2827_s14  ;;  %p2832_p2 = scmp.lt.s32.totalorder %s2213_s30, %s2213_s30 }
0x2ca7   :  { %p2833_p3 = scmp.lt.s32.totalorder %s2827_s14, %s2827_s14 }
0x2ca9   :  { %p2834_p4 = por %p2833_p3, %p2832_p2 }
0x2cab   :  { %p2835_p5 = pnand %p2834_p4, %p2828_p1 }
0x2cad   :  { %2838 = shalt.err (!%p2835_p5)
}
0x2cae   :  { %2218 = dma.vmem_to_hbm [thread:$0]  %s2213_s30, 64, %s3388_s11, [#allocation7], %s2860_s24, %s2860_s24, %s2865_s12  }
0x2caf   :  { %2849 = dma.done.wait [#allocation4], 32  }
0x2cb0   :  { %2850 = vsyncadd [#allocation4], 4294967264 }
0x2cb1   :  { %2851 = dma.done.wait [#allocation7], 128  }
0x2cb2   :  { %2852 = vsyncadd [#allocation7], 4294967168 }
0x2cb3   :  { %2228 = vsyncpa [#allocation3], 1 }
0x2cb4   :  { %2229 = vsyncpa [#allocation4], 1 }
0x2cb5   :  { %2230 = vsyncpa [#allocation7], 1 }

</bundles_post_ra>
